<compile_context>
chip_gen: v6e
topology: v6e:2x2x1
jax: 0.10.0
libtpu: 0.0.40
codegen_flags: <defaults>
</compile_context>

<pallas_src>
import math

import jax
import jax.numpy as jnp
from jax import lax
from jax.experimental import pallas as pl
from jax.experimental.pallas import tpu as pltpu

EPS = 1e-5
F32 = jnp.float32
BF16 = jnp.bfloat16


# ---------------------------------------------------------------------------
# kernel bodies: grid = (N,), one image per grid step
# ---------------------------------------------------------------------------

def _partial_stats(y):
    """One-pass per-channel sum and sum-of-squares of an (M, C) f32 tile."""
    s = jnp.sum(y, axis=0, keepdims=True)          # (1, C)
    ss = jnp.sum(y * y, axis=0, keepdims=True)     # (1, C)
    return jnp.concatenate([s, ss], axis=0).reshape(1, 2, y.shape[1])


def conv1_kernel(x_ref, w1_ref, y1_ref, st_ref):
    _, H, W, Cin = x_ref.shape
    P = w1_ref.shape[1]
    x2d = x_ref[...].reshape(H * W, Cin).astype(BF16)
    y = jnp.dot(x2d, w1_ref[...], preferred_element_type=F32)       # MXU, bf16
    st_ref[...] = _partial_stats(y)
    y1_ref[...] = y.reshape(1, H, W, P)


def conv2_kernel(y1_ref, sb1_ref, w2_ref, y2_ref, st_ref, pad_ref, col_ref):
    _, H, W, P = y1_ref.shape
    HW = H * W
    # bn1 folded into one per-channel FMA, then ReLU (f32).
    a = jnp.maximum(
        y1_ref[...].reshape(HW, P) * sb1_ref[0:1, :] + sb1_ref[1:2, :], 0.0)
    # Padded scratch: zero ONLY the halo strips; single interior store.
    pad_ref[0:1, :, :] = jnp.zeros((1, W + 2, P), F32)
    pad_ref[H + 1:H + 2, :, :] = jnp.zeros((1, W + 2, P), F32)
    pad_ref[:, 0:1, :] = jnp.zeros((H + 2, 1, P), F32)
    pad_ref[:, W + 1:W + 2, :] = jnp.zeros((H + 2, 1, P), F32)
    pad_ref[1:H + 1, 1:W + 1, :] = a.reshape(H, W, P)
    # im2col -> one MXU matmul with K = 9*P (instead of 9 K=P matmuls).
    for t in range(9):
        dy, dx = divmod(t, 3)
        col_ref[:, t * P:(t + 1) * P] = (
            pad_ref[dy:dy + H, dx:dx + W, :].reshape(HW, P))
    y = jnp.dot(col_ref[...].astype(BF16), w2_ref[...],
                preferred_element_type=F32)                         # (HW, P)
    st_ref[...] = _partial_stats(y)
    y2_ref[...] = y.reshape(1, H, W, P)


def conv3_kernel(y2_ref, sb2_ref, w3_ref, y3_ref, st_ref):
    _, H, W, P = y2_ref.shape
    C4 = w3_ref.shape[1]
    HW = H * W
    a = jnp.maximum(
        y2_ref[...].reshape(HW, P) * sb2_ref[0:1, :] + sb2_ref[1:2, :], 0.0)
    y = jnp.dot(a.astype(BF16), w3_ref[...], preferred_element_type=F32)
    st_ref[...] = _partial_stats(y)
    y3_ref[...] = y.reshape(1, H, W, C4)


def residual_kernel(y3_ref, x_ref, sb3_ref, out_ref):
    _, H, W, C4 = y3_ref.shape
    HW = H * W
    y = y3_ref[...].reshape(HW, C4) * sb3_ref[0:1, :] + sb3_ref[1:2, :]  # bn3
    out = jnp.maximum(y + x_ref[...].reshape(HW, C4), 0.0)   # + identity, relu
    out_ref[...] = out.reshape(1, H, W, C4)


# ---------------------------------------------------------------------------
# wrapper
# ---------------------------------------------------------------------------

def _nbytes(shape, dtype):
    return math.prod(shape) * jnp.dtype(dtype).itemsize


def _cparams(block_bytes, scratch_bytes=0):
    # double-buffered blocks + scratch + headroom; keep below v7x's 64 MiB.
    need = 2 * block_bytes + scratch_bytes + (2 << 20)
    return pltpu.CompilerParams(
        dimension_semantics=("parallel",),
        vmem_limit_bytes=int(min(max(need, 4 << 20), 60 << 20)))


def _fold_bn(pstats, gamma, beta, count):
    """(N,2,C) partial sums -> (2,C) per-channel (scale, bias) for y*s + b."""
    s = jnp.sum(pstats[:, 0, :], axis=0)
    ss = jnp.sum(pstats[:, 1, :], axis=0)
    mean = s / count
    var = jnp.maximum(ss / count - mean * mean, 0.0)   # one-pass, f32, clamped
    scale = gamma.reshape(-1) * lax.rsqrt(var + EPS)
    bias = beta.reshape(-1) - mean * scale
    return jnp.stack([scale, bias], axis=0).astype(F32)


@jax.jit
def bottleneck_forward(x_nhwc, params):
    N, H, W, Cin = x_nhwc.shape
    P = params["w1"].shape[1]
    C4 = params["w3"].shape[1]
    assert Cin == C4, "identity residual requires inplanes == planes * 4"
    HW = H * W
    cnt = jnp.float32(N * HW)

    # weights in bf16 for the MXU; 3x3 weight flattened to (9P, P) for im2col
    w1 = params["w1"].astype(BF16)                      # (Cin, P)
    w2 = params["w2"].astype(BF16).reshape(9 * P, P)    # (3,3,P,P) -> (9P, P)
    w3 = params["w3"].astype(BF16)                      # (P, C4)

    def img_spec(c):
        return pl.BlockSpec((1, H, W, c), lambda n: (n, 0, 0, 0))

    def bcast_spec(shape):
        return pl.BlockSpec(shape, lambda n: (0,) * len(shape))

    def stat_spec(c):
        return pl.BlockSpec((1, 2, c), lambda n: (n, 0, 0))

    # ---- stage 1: conv1 (1x1) + partial bn1 stats ---------------------------
    blk1 = (_nbytes((1, H, W, Cin), F32) + _nbytes((Cin, P), BF16)
            + _nbytes((1, H, W, P), F32) + _nbytes((1, 2, P), F32))
    y1, st1 = pl.pallas_call(
        conv1_kernel,
        grid=(N,),
        in_specs=[img_spec(Cin), bcast_spec((Cin, P))],
        out_specs=(img_spec(P), stat_spec(P)),
        out_shape=(jax.ShapeDtypeStruct((N, H, W, P), F32),
                   jax.ShapeDtypeStruct((N, 2, P), F32)),
        compiler_params=_cparams(blk1),
        cost_estimate=pl.CostEstimate(flops=2 * N * HW * Cin * P,
                                      transcendentals=0,
                                      bytes_accessed=N * blk1),
    )(x_nhwc, w1)
    sb1 = _fold_bn(st1, params["g1"], params["b1"], cnt)

    # ---- stage 2: bn1+relu -> conv2 (3x3, pad 1) + partial bn2 stats --------
    blk2 = (_nbytes((1, H, W, P), F32) + _nbytes((2, P), F32)
            + _nbytes((9 * P, P), BF16)
            + _nbytes((1, H, W, P), F32) + _nbytes((1, 2, P), F32))
    scr2 = _nbytes((H + 2, W + 2, P), F32) + _nbytes((HW, 9 * P), F32)
    y2, st2 = pl.pallas_call(
        conv2_kernel,
        grid=(N,),
        in_specs=[img_spec(P), bcast_spec((2, P)), bcast_spec((9 * P, P))],
        out_specs=(img_spec(P), stat_spec(P)),
        out_shape=(jax.ShapeDtypeStruct((N, H, W, P), F32),
                   jax.ShapeDtypeStruct((N, 2, P), F32)),
        scratch_shapes=[pltpu.VMEM((H + 2, W + 2, P), F32),
                        pltpu.VMEM((HW, 9 * P), F32)],
        compiler_params=_cparams(blk2, scr2),
        cost_estimate=pl.CostEstimate(flops=2 * N * HW * 9 * P * P,
                                      transcendentals=0,
                                      bytes_accessed=N * blk2),
    )(y1, sb1, w2)
    sb2 = _fold_bn(st2, params["g2"], params["b2"], cnt)

    # ---- stage 3: bn2+relu -> conv3 (1x1) + partial bn3 stats ---------------
    blk3 = (_nbytes((1, H, W, P), F32) + _nbytes((2, P), F32)
            + _nbytes((P, C4), BF16)
            + _nbytes((1, H, W, C4), F32) + _nbytes((1, 2, C4), F32))
    y3, st3 = pl.pallas_call(
        conv3_kernel,
        grid=(N,),
        in_specs=[img_spec(P), bcast_spec((2, P)), bcast_spec((P, C4))],
        out_specs=(img_spec(C4), stat_spec(C4)),
        out_shape=(jax.ShapeDtypeStruct((N, H, W, C4), F32),
                   jax.ShapeDtypeStruct((N, 2, C4), F32)),
        compiler_params=_cparams(blk3),
        cost_estimate=pl.CostEstimate(flops=2 * N * HW * P * C4,
                                      transcendentals=0,
                                      bytes_accessed=N * blk3),
    )(y2, sb2, w3)
    sb3 = _fold_bn(st3, params["g3"], params["b3"], cnt)

    # ---- stage 4: bn3 + identity residual + relu ----------------------------
    blk4 = (2 * _nbytes((1, H, W, C4), F32) + _nbytes((2, C4), F32)
            + _nbytes((1, H, W, C4), F32))
    out = pl.pallas_call(
        residual_kernel,
        grid=(N,),
        in_specs=[img_spec(C4), img_spec(C4), bcast_spec((2, C4))],
        out_specs=img_spec(C4),
        out_shape=jax.ShapeDtypeStruct((N, H, W, C4), F32),
        compiler_params=_cparams(blk4),
        cost_estimate=pl.CostEstimate(flops=3 * N * HW * C4,
                                      transcendentals=0,
                                      bytes_accessed=N * blk4),
    )(y3, x_nhwc, sb3)
    return out


# ---------------------------------------------------------------------------
# pure-JAX reference (bf16-rounded matmul inputs to mirror the MXU precision)
# ---------------------------------------------------------------------------

def _r16(v):
    return v.astype(BF16).astype(F32)


def reference_nhwc(x, p):
    def conv(a, w, padding):
        return lax.conv_general_dilated(
            _r16(a), _r16(w), (1, 1), padding,
            dimension_numbers=("NHWC", "HWIO", "NHWC"),
            precision=lax.Precision.HIGHEST,
            preferred_element_type=F32)

    def bn(y, g, b):
        mean = jnp.mean(y, axis=(0, 1, 2), keepdims=True)
        var = jnp.mean((y - mean) ** 2, axis=(0, 1, 2), keepdims=True)
        return ((y - mean) * lax.rsqrt(var + EPS) * g.reshape(1, 1, 1, -1)
                + b.reshape(1, 1, 1, -1))

    w1 = p["w1"][None, None]          # (1,1,Cin,P)
    w3 = p["w3"][None, None]          # (1,1,P,C4)
    out = jax.nn.relu(bn(conv(x, w1, "VALID"), p["g1"], p["b1"]))
    out = jax.nn.relu(bn(conv(out, p["w2"], ((1, 1), (1, 1))), p["g2"], p["b2"]))
    out = bn(conv(out, w3, "VALID"), p["g3"], p["b3"])
    return jax.nn.relu(out + x)


if __name__ == "__main__":
    key = jax.random.PRNGKey(0)
    N, H, W = 2, 8, 8
    planes = 8
    inplanes = planes * 4            # 32: identity residual is shape-compatible

    ks = jax.random.split(key, 10)
    params = {
        "w1": jax.random.normal(ks[0], (inplanes, planes), F32) * 0.1,
        "g1": 1.0 + 0.1 * jax.random.normal(ks[1], (planes,), F32),
        "b1": 0.1 * jax.random.normal(ks[2], (planes,), F32),
        "w2": jax.random.normal(ks[3], (3, 3, planes, planes), F32) * 0.1,
        "g2": 1.0 + 0.1 * jax.random.normal(ks[4], (planes,), F32),
        "b2": 0.1 * jax.random.normal(ks[5], (planes,), F32),
        "w3": jax.random.normal(ks[6], (planes, planes * 4), F32) * 0.1,
        "g3": 1.0 + 0.1 * jax.random.normal(ks[7], (planes * 4,), F32),
        "b3": 0.1 * jax.random.normal(ks[8], (planes * 4,), F32),
    }

    # PyTorch-style NCHW input; kernels run NHWC (channels lane-dense).
    x_nchw = jax.random.normal(ks[9], (N, inplanes, H, W), F32)
    x_nhwc = jnp.transpose(x_nchw, (0, 2, 3, 1))

    out_nhwc = jax.block_until_ready(bottleneck_forward(x_nhwc, params))
    out_nchw = jnp.transpose(out_nhwc, (0, 3, 1, 2))

    ref_nchw = jnp.transpose(reference_nhwc(x_nhwc, params), (0, 3, 1, 2))
    assert out_nchw.shape == ref_nchw.shape == (N, inplanes, H, W)
    err = float(jnp.max(jnp.abs(out_nchw - ref_nchw)))
    assert err < 3e-3, err
    print("KERNEL_OK")
</pallas_src>

<mosaic_0001>
module attributes {stable_mosaic.version = 11 : i64} {
  func.func @conv1_kernel(%arg0: i32, %arg1: memref<1x8x8x32xf32, #tpu.memory_space<vmem>>, %arg2: memref<32x8xbf16, #tpu.memory_space<vmem>>, %arg3: memref<1x8x8x8xf32, #tpu.memory_space<vmem>>, %arg4: memref<1x2x8xf32, #tpu.memory_space<vmem>>) attributes {dimension_semantics = [#tpu.dimension_semantics<parallel>], iteration_bounds = array<i64: 2>, scalar_prefetch = 0 : i64, scratch_operands = 0 : i64, tpu.core_type = #tpu.core_type<tc>, window_params = [{transform_indices = @transform_0, window_bounds = array<i64: 1, 8, 8, 32>}, {pipeline_mode = #tpu.pipeline_mode<synchronous>, transform_indices = @transform_1, window_bounds = array<i64: 32, 8>}, {transform_indices = @transform_2, window_bounds = array<i64: 1, 8, 8, 8>}, {transform_indices = @transform_3, window_bounds = array<i64: 1, 2, 8>}]} {
    %c0 = arith.constant 0 : index
    %c0_0 = arith.constant 0 : index
    %c0_1 = arith.constant 0 : index
    %c0_2 = arith.constant 0 : index
    %0 = vector.load %arg1[%c0, %c0_0, %c0_1, %c0_2] : memref<1x8x8x32xf32, #tpu.memory_space<vmem>>, vector<1x8x8x32xf32>
    %1 = vector.shape_cast %0 : vector<1x8x8x32xf32> to vector<64x32xf32>
    %2 = arith.truncf %1 : vector<64x32xf32> to vector<64x32xbf16>
    %c0_3 = arith.constant 0 : index
    %c0_4 = arith.constant 0 : index
    %3 = vector.load %arg2[%c0_3, %c0_4] : memref<32x8xbf16, #tpu.memory_space<vmem>>, vector<32x8xbf16>
    %cst = arith.constant dense<0.000000e+00> : vector<64x8xf32>
    %4 = tpu.matmul %2, %3, %cst {dimension_numbers = #tpu.dot_dimension_numbers<[1], [0], [0], [1], [0, 0, 1, 1], [], []>} : vector<64x32xbf16>, vector<32x8xbf16>, vector<64x8xf32> -> vector<64x8xf32>
    %cst_5 = arith.constant dense<0.000000e+00> : vector<8xf32>
    %5 = vector.multi_reduction <add>, %4, %cst_5 [0] : vector<64x8xf32> to vector<8xf32>
    %6 = vector.shape_cast %5 : vector<8xf32> to vector<1x8xf32>
    %7 = arith.mulf %4, %4 : vector<64x8xf32>
    %cst_6 = arith.constant dense<0.000000e+00> : vector<8xf32>
    %8 = vector.multi_reduction <add>, %7, %cst_6 [0] : vector<64x8xf32> to vector<8xf32>
    %9 = vector.shape_cast %8 : vector<8xf32> to vector<1x8xf32>
    %10 = tpu.concatenate %6, %9 in 0 : vector<1x8xf32>, vector<1x8xf32> -> vector<2x8xf32>
    %11 = vector.shape_cast %10 : vector<2x8xf32> to vector<1x2x8xf32>
    %c0_7 = arith.constant 0 : index
    %c0_8 = arith.constant 0 : index
    %c0_9 = arith.constant 0 : index
    %12 = vector.load %arg4[%c0_7, %c0_8, %c0_9] : memref<1x2x8xf32, #tpu.memory_space<vmem>>, vector<1x2x8xf32>
    tpu.vector_store %arg4[%c0_7, %c0_8, %c0_9], %11 {strides = array<i32>} : memref<1x2x8xf32, #tpu.memory_space<vmem>>, vector<1x2x8xf32>,
    %13 = vector.shape_cast %4 : vector<64x8xf32> to vector<1x8x8x8xf32>
    %c0_10 = arith.constant 0 : index
    %c0_11 = arith.constant 0 : index
    %c0_12 = arith.constant 0 : index
    %c0_13 = arith.constant 0 : index
    %14 = vector.load %arg3[%c0_10, %c0_11, %c0_12, %c0_13] : memref<1x8x8x8xf32, #tpu.memory_space<vmem>>, vector<1x8x8x8xf32>
    tpu.vector_store %arg3[%c0_10, %c0_11, %c0_12, %c0_13], %13 {strides = array<i32>} : memref<1x8x8x8xf32, #tpu.memory_space<vmem>>, vector<1x8x8x8xf32>,
    return
  }
  func.func @transform_0(%arg0: i32) -> (i32, i32, i32, i32) {
    %c0_i32 = arith.constant 0 : i32
    %c0_i32_0 = arith.constant 0 : i32
    %c0_i32_1 = arith.constant 0 : i32
    %c0_i32_2 = arith.constant 0 : i32
    return %arg0, %c0_i32, %c0_i32_0, %c0_i32_1 : i32, i32, i32, i32
  }
  func.func @transform_1(%arg0: i32) -> (i32, i32) {
    %c0_i32 = arith.constant 0 : i32
    %c0_i32_0 = arith.constant 0 : i32
    %c0_i32_1 = arith.constant 0 : i32
    return %c0_i32, %c0_i32_0 : i32, i32
  }
  func.func @transform_2(%arg0: i32) -> (i32, i32, i32, i32) {
    %c0_i32 = arith.constant 0 : i32
    %c0_i32_0 = arith.constant 0 : i32
    %c0_i32_1 = arith.constant 0 : i32
    %c0_i32_2 = arith.constant 0 : i32
    return %arg0, %c0_i32, %c0_i32_0, %c0_i32_1 : i32, i32, i32, i32
  }
  func.func @transform_3(%arg0: i32) -> (i32, i32, i32) {
    %c0_i32 = arith.constant 0 : i32
    %c0_i32_0 = arith.constant 0 : i32
    %c0_i32_1 = arith.constant 0 : i32
    return %arg0, %c0_i32, %c0_i32_0 : i32, i32, i32
  }
}

module attributes {stable_mosaic.version = 11 : i64} {
  func.func @conv2_kernel(%arg0: i32, %arg1: memref<1x8x8x8xf32, #tpu.memory_space<vmem>>, %arg2: memref<2x8xf32, #tpu.memory_space<vmem>>, %arg3: memref<72x8xbf16, #tpu.memory_space<vmem>>, %arg4: memref<1x8x8x8xf32, #tpu.memory_space<vmem>>, %arg5: memref<1x2x8xf32, #tpu.memory_space<vmem>>, %arg6: memref<10x10x8xf32, #tpu.memory_space<vmem>>, %arg7: memref<64x72xf32, #tpu.memory_space<vmem>>) attributes {dimension_semantics = [#tpu.dimension_semantics<parallel>], iteration_bounds = array<i64: 2>, scalar_prefetch = 0 : i64, scratch_operands = 2 : i64, tpu.core_type = #tpu.core_type<tc>, window_params = [{transform_indices = @transform_0, window_bounds = array<i64: 1, 8, 8, 8>}, {pipeline_mode = #tpu.pipeline_mode<synchronous>, transform_indices = @transform_1, window_bounds = array<i64: 2, 8>}, {pipeline_mode = #tpu.pipeline_mode<synchronous>, transform_indices = @transform_2, window_bounds = array<i64: 72, 8>}, {transform_indices = @transform_3, window_bounds = array<i64: 1, 8, 8, 8>}, {transform_indices = @transform_4, window_bounds = array<i64: 1, 2, 8>}]} {
    %c0 = arith.constant 0 : index
    %c0_0 = arith.constant 0 : index
    %c0_1 = arith.constant 0 : index
    %c0_2 = arith.constant 0 : index
    %0 = vector.load %arg1[%c0, %c0_0, %c0_1, %c0_2] : memref<1x8x8x8xf32, #tpu.memory_space<vmem>>, vector<1x8x8x8xf32>
    %1 = vector.shape_cast %0 : vector<1x8x8x8xf32> to vector<64x8xf32>
    %c0_3 = arith.constant 0 : index
    %c0_4 = arith.constant 0 : index
    %2 = vector.load %arg2[%c0_3, %c0_4] : memref<2x8xf32, #tpu.memory_space<vmem>>, vector<1x8xf32>
    %3 = vector.broadcast %2 : vector<1x8xf32> to vector<64x8xf32>
    %4 = arith.mulf %1, %3 : vector<64x8xf32>
    %c1 = arith.constant 1 : index
    %c0_5 = arith.constant 0 : index
    %5 = vector.load %arg2[%c1, %c0_5] : memref<2x8xf32, #tpu.memory_space<vmem>>, vector<1x8xf32>
    %6 = vector.broadcast %5 : vector<1x8xf32> to vector<64x8xf32>
    %7 = arith.addf %4, %6 : vector<64x8xf32>
    %cst = arith.constant 0.000000e+00 : f32
    %8 = vector.broadcast %cst : f32 to vector<64x8xf32>
    %9 = arith.maximumf %7, %8 : vector<64x8xf32>
    %cst_6 = arith.constant 0.000000e+00 : f32
    %10 = vector.broadcast %cst_6 : f32 to vector<1x10x8xf32>
    %c0_7 = arith.constant 0 : index
    %c0_8 = arith.constant 0 : index
    %c0_9 = arith.constant 0 : index
    %11 = vector.load %arg6[%c0_7, %c0_8, %c0_9] : memref<10x10x8xf32, #tpu.memory_space<vmem>>, vector<1x10x8xf32>
    tpu.vector_store %arg6[%c0_7, %c0_8, %c0_9], %10 {strides = array<i32>} : memref<10x10x8xf32, #tpu.memory_space<vmem>>, vector<1x10x8xf32>,
    %cst_10 = arith.constant 0.000000e+00 : f32
    %12 = vector.broadcast %cst_10 : f32 to vector<1x10x8xf32>
    %c9 = arith.constant 9 : index
    %c0_11 = arith.constant 0 : index
    %c0_12 = arith.constant 0 : index
    %13 = vector.load %arg6[%c9, %c0_11, %c0_12] : memref<10x10x8xf32, #tpu.memory_space<vmem>>, vector<1x10x8xf32>
    tpu.vector_store %arg6[%c9, %c0_11, %c0_12], %12 {strides = array<i32>} : memref<10x10x8xf32, #tpu.memory_space<vmem>>, vector<1x10x8xf32>,
    %cst_13 = arith.constant 0.000000e+00 : f32
    %14 = vector.broadcast %cst_13 : f32 to vector<10x1x8xf32>
    %c0_14 = arith.constant 0 : index
    %c0_15 = arith.constant 0 : index
    %c0_16 = arith.constant 0 : index
    %15 = vector.load %arg6[%c0_14, %c0_15, %c0_16] : memref<10x10x8xf32, #tpu.memory_space<vmem>>, vector<10x1x8xf32>
    tpu.vector_store %arg6[%c0_14, %c0_15, %c0_16], %14 {strides = array<i32>} : memref<10x10x8xf32, #tpu.memory_space<vmem>>, vector<10x1x8xf32>,
    %cst_17 = arith.constant 0.000000e+00 : f32
    %16 = vector.broadcast %cst_17 : f32 to vector<10x1x8xf32>
    %c0_18 = arith.constant 0 : index
    %c9_19 = arith.constant 9 : index
    %c0_20 = arith.constant 0 : index
    %17 = vector.load %arg6[%c0_18, %c9_19, %c0_20] : memref<10x10x8xf32, #tpu.memory_space<vmem>>, vector<10x1x8xf32>
    tpu.vector_store %arg6[%c0_18, %c9_19, %c0_20], %16 {strides = array<i32>} : memref<10x10x8xf32, #tpu.memory_space<vmem>>, vector<10x1x8xf32>,
    %18 = vector.shape_cast %9 : vector<64x8xf32> to vector<8x8x8xf32>
    %c1_21 = arith.constant 1 : index
    %c1_22 = arith.constant 1 : index
    %c0_23 = arith.constant 0 : index
    %19 = vector.load %arg6[%c1_21, %c1_22, %c0_23] : memref<10x10x8xf32, #tpu.memory_space<vmem>>, vector<8x8x8xf32>
    tpu.vector_store %arg6[%c1_21, %c1_22, %c0_23], %18 {strides = array<i32>} : memref<10x10x8xf32, #tpu.memory_space<vmem>>, vector<8x8x8xf32>,
    %c0_24 = arith.constant 0 : index
    %c0_25 = arith.constant 0 : index
    %c0_26 = arith.constant 0 : index
    %20 = vector.load %arg6[%c0_24, %c0_25, %c0_26] : memref<10x10x8xf32, #tpu.memory_space<vmem>>, vector<8x8x8xf32>
    %21 = vector.shape_cast %20 : vector<8x8x8xf32> to vector<64x8xf32>
    %c0_27 = arith.constant 0 : index
    %c0_28 = arith.constant 0 : index
    %22 = vector.load %arg7[%c0_27, %c0_28] : memref<64x72xf32, #tpu.memory_space<vmem>>, vector<64x8xf32>
    tpu.vector_store %arg7[%c0_27, %c0_28], %21 {strides = array<i32>} : memref<64x72xf32, #tpu.memory_space<vmem>>, vector<64x8xf32>,
    %c0_29 = arith.constant 0 : index
    %c1_30 = arith.constant 1 : index
    %c0_31 = arith.constant 0 : index
    %23 = vector.load %arg6[%c0_29, %c1_30, %c0_31] : memref<10x10x8xf32, #tpu.memory_space<vmem>>, vector<8x8x8xf32>
    %24 = vector.shape_cast %23 : vector<8x8x8xf32> to vector<64x8xf32>
    %c0_32 = arith.constant 0 : index
    %c8 = arith.constant 8 : index
    %25 = vector.load %arg7[%c0_32, %c8] : memref<64x72xf32, #tpu.memory_space<vmem>>, vector<64x8xf32>
    tpu.vector_store %arg7[%c0_32, %c8], %24 {strides = array<i32>} : memref<64x72xf32, #tpu.memory_space<vmem>>, vector<64x8xf32>,
    %c0_33 = arith.constant 0 : index
    %c2 = arith.constant 2 : index
    %c0_34 = arith.constant 0 : index
    %26 = vector.load %arg6[%c0_33, %c2, %c0_34] : memref<10x10x8xf32, #tpu.memory_space<vmem>>, vector<8x8x8xf32>
    %27 = vector.shape_cast %26 : vector<8x8x8xf32> to vector<64x8xf32>
    %c0_35 = arith.constant 0 : index
    %c16 = arith.constant 16 : index
    %28 = vector.load %arg7[%c0_35, %c16] : memref<64x72xf32, #tpu.memory_space<vmem>>, vector<64x8xf32>
    tpu.vector_store %arg7[%c0_35, %c16], %27 {strides = array<i32>} : memref<64x72xf32, #tpu.memory_space<vmem>>, vector<64x8xf32>,
    %c1_36 = arith.constant 1 : index
    %c0_37 = arith.constant 0 : index
    %c0_38 = arith.constant 0 : index
    %29 = vector.load %arg6[%c1_36, %c0_37, %c0_38] : memref<10x10x8xf32, #tpu.memory_space<vmem>>, vector<8x8x8xf32>
    %30 = vector.shape_cast %29 : vector<8x8x8xf32> to vector<64x8xf32>
    %c0_39 = arith.constant 0 : index
    %c24 = arith.constant 24 : index
    %31 = vector.load %arg7[%c0_39, %c24] : memref<64x72xf32, #tpu.memory_space<vmem>>, vector<64x8xf32>
    tpu.vector_store %arg7[%c0_39, %c24], %30 {strides = array<i32>} : memref<64x72xf32, #tpu.memory_space<vmem>>, vector<64x8xf32>,
    %c1_40 = arith.constant 1 : index
    %c1_41 = arith.constant 1 : index
    %c0_42 = arith.constant 0 : index
    %32 = vector.load %arg6[%c1_40, %c1_41, %c0_42] : memref<10x10x8xf32, #tpu.memory_space<vmem>>, vector<8x8x8xf32>
    %33 = vector.shape_cast %32 : vector<8x8x8xf32> to vector<64x8xf32>
    %c0_43 = arith.constant 0 : index
    %c32 = arith.constant 32 : index
    %34 = vector.load %arg7[%c0_43, %c32] : memref<64x72xf32, #tpu.memory_space<vmem>>, vector<64x8xf32>
    tpu.vector_store %arg7[%c0_43, %c32], %33 {strides = array<i32>} : memref<64x72xf32, #tpu.memory_space<vmem>>, vector<64x8xf32>,
    %c1_44 = arith.constant 1 : index
    %c2_45 = arith.constant 2 : index
    %c0_46 = arith.constant 0 : index
    %35 = vector.load %arg6[%c1_44, %c2_45, %c0_46] : memref<10x10x8xf32, #tpu.memory_space<vmem>>, vector<8x8x8xf32>
    %36 = vector.shape_cast %35 : vector<8x8x8xf32> to vector<64x8xf32>
    %c0_47 = arith.constant 0 : index
    %c40 = arith.constant 40 : index
    %37 = vector.load %arg7[%c0_47, %c40] : memref<64x72xf32, #tpu.memory_space<vmem>>, vector<64x8xf32>
    tpu.vector_store %arg7[%c0_47, %c40], %36 {strides = array<i32>} : memref<64x72xf32, #tpu.memory_space<vmem>>, vector<64x8xf32>,
    %c2_48 = arith.constant 2 : index
    %c0_49 = arith.constant 0 : index
    %c0_50 = arith.constant 0 : index
    %38 = vector.load %arg6[%c2_48, %c0_49, %c0_50] : memref<10x10x8xf32, #tpu.memory_space<vmem>>, vector<8x8x8xf32>
    %39 = vector.shape_cast %38 : vector<8x8x8xf32> to vector<64x8xf32>
    %c0_51 = arith.constant 0 : index
    %c48 = arith.constant 48 : index
    %40 = vector.load %arg7[%c0_51, %c48] : memref<64x72xf32, #tpu.memory_space<vmem>>, vector<64x8xf32>
    tpu.vector_store %arg7[%c0_51, %c48], %39 {strides = array<i32>} : memref<64x72xf32, #tpu.memory_space<vmem>>, vector<64x8xf32>,
    %c2_52 = arith.constant 2 : index
    %c1_53 = arith.constant 1 : index
    %c0_54 = arith.constant 0 : index
    %41 = vector.load %arg6[%c2_52, %c1_53, %c0_54] : memref<10x10x8xf32, #tpu.memory_space<vmem>>, vector<8x8x8xf32>
    %42 = vector.shape_cast %41 : vector<8x8x8xf32> to vector<64x8xf32>
    %c0_55 = arith.constant 0 : index
    %c56 = arith.constant 56 : index
    %43 = vector.load %arg7[%c0_55, %c56] : memref<64x72xf32, #tpu.memory_space<vmem>>, vector<64x8xf32>
    tpu.vector_store %arg7[%c0_55, %c56], %42 {strides = array<i32>} : memref<64x72xf32, #tpu.memory_space<vmem>>, vector<64x8xf32>,
    %c2_56 = arith.constant 2 : index
    %c2_57 = arith.constant 2 : index
    %c0_58 = arith.constant 0 : index
    %44 = vector.load %arg6[%c2_56, %c2_57, %c0_58] : memref<10x10x8xf32, #tpu.memory_space<vmem>>, vector<8x8x8xf32>
    %45 = vector.shape_cast %44 : vector<8x8x8xf32> to vector<64x8xf32>
    %c0_59 = arith.constant 0 : index
    %c64 = arith.constant 64 : index
    %46 = vector.load %arg7[%c0_59, %c64] : memref<64x72xf32, #tpu.memory_space<vmem>>, vector<64x8xf32>
    tpu.vector_store %arg7[%c0_59, %c64], %45 {strides = array<i32>} : memref<64x72xf32, #tpu.memory_space<vmem>>, vector<64x8xf32>,
    %c0_60 = arith.constant 0 : index
    %c0_61 = arith.constant 0 : index
    %47 = vector.load %arg7[%c0_60, %c0_61] : memref<64x72xf32, #tpu.memory_space<vmem>>, vector<64x72xf32>
    %48 = arith.truncf %47 : vector<64x72xf32> to vector<64x72xbf16>
    %c0_62 = arith.constant 0 : index
    %c0_63 = arith.constant 0 : index
    %49 = vector.load %arg3[%c0_62, %c0_63] : memref<72x8xbf16, #tpu.memory_space<vmem>>, vector<72x8xbf16>
    %cst_64 = arith.constant dense<0.000000e+00> : vector<64x8xf32>
    %50 = tpu.matmul %48, %49, %cst_64 {dimension_numbers = #tpu.dot_dimension_numbers<[1], [0], [0], [1], [0, 0, 1, 1], [], []>} : vector<64x72xbf16>, vector<72x8xbf16>, vector<64x8xf32> -> vector<64x8xf32>
    %cst_65 = arith.constant dense<0.000000e+00> : vector<8xf32>
    %51 = vector.multi_reduction <add>, %50, %cst_65 [0] : vector<64x8xf32> to vector<8xf32>
    %52 = vector.shape_cast %51 : vector<8xf32> to vector<1x8xf32>
    %53 = arith.mulf %50, %50 : vector<64x8xf32>
    %cst_66 = arith.constant dense<0.000000e+00> : vector<8xf32>
    %54 = vector.multi_reduction <add>, %53, %cst_66 [0] : vector<64x8xf32> to vector<8xf32>
    %55 = vector.shape_cast %54 : vector<8xf32> to vector<1x8xf32>
    %56 = tpu.concatenate %52, %55 in 0 : vector<1x8xf32>, vector<1x8xf32> -> vector<2x8xf32>
    %57 = vector.shape_cast %56 : vector<2x8xf32> to vector<1x2x8xf32>
    %c0_67 = arith.constant 0 : index
    %c0_68 = arith.constant 0 : index
    %c0_69 = arith.constant 0 : index
    %58 = vector.load %arg5[%c0_67, %c0_68, %c0_69] : memref<1x2x8xf32, #tpu.memory_space<vmem>>, vector<1x2x8xf32>
    tpu.vector_store %arg5[%c0_67, %c0_68, %c0_69], %57 {strides = array<i32>} : memref<1x2x8xf32, #tpu.memory_space<vmem>>, vector<1x2x8xf32>,
    %59 = vector.shape_cast %50 : vector<64x8xf32> to vector<1x8x8x8xf32>
    %c0_70 = arith.constant 0 : index
    %c0_71 = arith.constant 0 : index
    %c0_72 = arith.constant 0 : index
    %c0_73 = arith.constant 0 : index
    %60 = vector.load %arg4[%c0_70, %c0_71, %c0_72, %c0_73] : memref<1x8x8x8xf32, #tpu.memory_space<vmem>>, vector<1x8x8x8xf32>
    tpu.vector_store %arg4[%c0_70, %c0_71, %c0_72, %c0_73], %59 {strides = array<i32>} : memref<1x8x8x8xf32, #tpu.memory_space<vmem>>, vector<1x8x8x8xf32>,
    return
  }
  func.func @transform_0(%arg0: i32) -> (i32, i32, i32, i32) {
    %c0_i32 = arith.constant 0 : i32
    %c0_i32_0 = arith.constant 0 : i32
    %c0_i32_1 = arith.constant 0 : i32
    %c0_i32_2 = arith.constant 0 : i32
    return %arg0, %c0_i32, %c0_i32_0, %c0_i32_1 : i32, i32, i32, i32
  }
  func.func @transform_1(%arg0: i32) -> (i32, i32) {
    %c0_i32 = arith.constant 0 : i32
    %c0_i32_0 = arith.constant 0 : i32
    %c0_i32_1 = arith.constant 0 : i32
    return %c0_i32, %c0_i32_0 : i32, i32
  }
  func.func @transform_2(%arg0: i32) -> (i32, i32) {
    %c0_i32 = arith.constant 0 : i32
    %c0_i32_0 = arith.constant 0 : i32
    %c0_i32_1 = arith.constant 0 : i32
    return %c0_i32, %c0_i32_0 : i32, i32
  }
  func.func @transform_3(%arg0: i32) -> (i32, i32, i32, i32) {
    %c0_i32 = arith.constant 0 : i32
    %c0_i32_0 = arith.constant 0 : i32
    %c0_i32_1 = arith.constant 0 : i32
    %c0_i32_2 = arith.constant 0 : i32
    return %arg0, %c0_i32, %c0_i32_0, %c0_i32_1 : i32, i32, i32, i32
  }
  func.func @transform_4(%arg0: i32) -> (i32, i32, i32) {
    %c0_i32 = arith.constant 0 : i32
    %c0_i32_0 = arith.constant 0 : i32
    %c0_i32_1 = arith.constant 0 : i32
    return %arg0, %c0_i32, %c0_i32_0 : i32, i32, i32
  }
}

module attributes {stable_mosaic.version = 11 : i64} {
  func.func @conv3_kernel(%arg0: i32, %arg1: memref<1x8x8x8xf32, #tpu.memory_space<vmem>>, %arg2: memref<2x8xf32, #tpu.memory_space<vmem>>, %arg3: memref<8x32xbf16, #tpu.memory_space<vmem>>, %arg4: memref<1x8x8x32xf32, #tpu.memory_space<vmem>>, %arg5: memref<1x2x32xf32, #tpu.memory_space<vmem>>) attributes {dimension_semantics = [#tpu.dimension_semantics<parallel>], iteration_bounds = array<i64: 2>, scalar_prefetch = 0 : i64, scratch_operands = 0 : i64, tpu.core_type = #tpu.core_type<tc>, window_params = [{transform_indices = @transform_0, window_bounds = array<i64: 1, 8, 8, 8>}, {pipeline_mode = #tpu.pipeline_mode<synchronous>, transform_indices = @transform_1, window_bounds = array<i64: 2, 8>}, {pipeline_mode = #tpu.pipeline_mode<synchronous>, transform_indices = @transform_2, window_bounds = array<i64: 8, 32>}, {transform_indices = @transform_3, window_bounds = array<i64: 1, 8, 8, 32>}, {transform_indices = @transform_4, window_bounds = array<i64: 1, 2, 32>}]} {
    %c0 = arith.constant 0 : index
    %c0_0 = arith.constant 0 : index
    %c0_1 = arith.constant 0 : index
    %c0_2 = arith.constant 0 : index
    %0 = vector.load %arg1[%c0, %c0_0, %c0_1, %c0_2] : memref<1x8x8x8xf32, #tpu.memory_space<vmem>>, vector<1x8x8x8xf32>
    %1 = vector.shape_cast %0 : vector<1x8x8x8xf32> to vector<64x8xf32>
    %c0_3 = arith.constant 0 : index
    %c0_4 = arith.constant 0 : index
    %2 = vector.load %arg2[%c0_3, %c0_4] : memref<2x8xf32, #tpu.memory_space<vmem>>, vector<1x8xf32>
    %3 = vector.broadcast %2 : vector<1x8xf32> to vector<64x8xf32>
    %4 = arith.mulf %1, %3 : vector<64x8xf32>
    %c1 = arith.constant 1 : index
    %c0_5 = arith.constant 0 : index
    %5 = vector.load %arg2[%c1, %c0_5] : memref<2x8xf32, #tpu.memory_space<vmem>>, vector<1x8xf32>
    %6 = vector.broadcast %5 : vector<1x8xf32> to vector<64x8xf32>
    %7 = arith.addf %4, %6 : vector<64x8xf32>
    %cst = arith.constant 0.000000e+00 : f32
    %8 = vector.broadcast %cst : f32 to vector<64x8xf32>
    %9 = arith.maximumf %7, %8 : vector<64x8xf32>
    %10 = arith.truncf %9 : vector<64x8xf32> to vector<64x8xbf16>
    %c0_6 = arith.constant 0 : index
    %c0_7 = arith.constant 0 : index
    %11 = vector.load %arg3[%c0_6, %c0_7] : memref<8x32xbf16, #tpu.memory_space<vmem>>, vector<8x32xbf16>
    %cst_8 = arith.constant dense<0.000000e+00> : vector<64x32xf32>
    %12 = tpu.matmul %10, %11, %cst_8 {dimension_numbers = #tpu.dot_dimension_numbers<[1], [0], [0], [1], [0, 0, 1, 1], [], []>} : vector<64x8xbf16>, vector<8x32xbf16>, vector<64x32xf32> -> vector<64x32xf32>
    %cst_9 = arith.constant dense<0.000000e+00> : vector<32xf32>
    %13 = vector.multi_reduction <add>, %12, %cst_9 [0] : vector<64x32xf32> to vector<32xf32>
    %14 = vector.shape_cast %13 : vector<32xf32> to vector<1x32xf32>
    %15 = arith.mulf %12, %12 : vector<64x32xf32>
    %cst_10 = arith.constant dense<0.000000e+00> : vector<32xf32>
    %16 = vector.multi_reduction <add>, %15, %cst_10 [0] : vector<64x32xf32> to vector<32xf32>
    %17 = vector.shape_cast %16 : vector<32xf32> to vector<1x32xf32>
    %18 = tpu.concatenate %14, %17 in 0 : vector<1x32xf32>, vector<1x32xf32> -> vector<2x32xf32>
    %19 = vector.shape_cast %18 : vector<2x32xf32> to vector<1x2x32xf32>
    %c0_11 = arith.constant 0 : index
    %c0_12 = arith.constant 0 : index
    %c0_13 = arith.constant 0 : index
    %20 = vector.load %arg5[%c0_11, %c0_12, %c0_13] : memref<1x2x32xf32, #tpu.memory_space<vmem>>, vector<1x2x32xf32>
    tpu.vector_store %arg5[%c0_11, %c0_12, %c0_13], %19 {strides = array<i32>} : memref<1x2x32xf32, #tpu.memory_space<vmem>>, vector<1x2x32xf32>,
    %21 = vector.shape_cast %12 : vector<64x32xf32> to vector<1x8x8x32xf32>
    %c0_14 = arith.constant 0 : index
    %c0_15 = arith.constant 0 : index
    %c0_16 = arith.constant 0 : index
    %c0_17 = arith.constant 0 : index
    %22 = vector.load %arg4[%c0_14, %c0_15, %c0_16, %c0_17] : memref<1x8x8x32xf32, #tpu.memory_space<vmem>>, vector<1x8x8x32xf32>
    tpu.vector_store %arg4[%c0_14, %c0_15, %c0_16, %c0_17], %21 {strides = array<i32>} : memref<1x8x8x32xf32, #tpu.memory_space<vmem>>, vector<1x8x8x32xf32>,
    return
  }
  func.func @transform_0(%arg0: i32) -> (i32, i32, i32, i32) {
    %c0_i32 = arith.constant 0 : i32
    %c0_i32_0 = arith.constant 0 : i32
    %c0_i32_1 = arith.constant 0 : i32
    %c0_i32_2 = arith.constant 0 : i32
    return %arg0, %c0_i32, %c0_i32_0, %c0_i32_1 : i32, i32, i32, i32
  }
  func.func @transform_1(%arg0: i32) -> (i32, i32) {
    %c0_i32 = arith.constant 0 : i32
    %c0_i32_0 = arith.constant 0 : i32
    %c0_i32_1 = arith.constant 0 : i32
    return %c0_i32, %c0_i32_0 : i32, i32
  }
  func.func @transform_2(%arg0: i32) -> (i32, i32) {
    %c0_i32 = arith.constant 0 : i32
    %c0_i32_0 = arith.constant 0 : i32
    %c0_i32_1 = arith.constant 0 : i32
    return %c0_i32, %c0_i32_0 : i32, i32
  }
  func.func @transform_3(%arg0: i32) -> (i32, i32, i32, i32) {
    %c0_i32 = arith.constant 0 : i32
    %c0_i32_0 = arith.constant 0 : i32
    %c0_i32_1 = arith.constant 0 : i32
    %c0_i32_2 = arith.constant 0 : i32
    return %arg0, %c0_i32, %c0_i32_0, %c0_i32_1 : i32, i32, i32, i32
  }
  func.func @transform_4(%arg0: i32) -> (i32, i32, i32) {
    %c0_i32 = arith.constant 0 : i32
    %c0_i32_0 = arith.constant 0 : i32
    %c0_i32_1 = arith.constant 0 : i32
    return %arg0, %c0_i32, %c0_i32_0 : i32, i32, i32
  }
}

module attributes {stable_mosaic.version = 11 : i64} {
  func.func @residual_kernel(%arg0: i32, %arg1: memref<1x8x8x32xf32, #tpu.memory_space<vmem>>, %arg2: memref<1x8x8x32xf32, #tpu.memory_space<vmem>>, %arg3: memref<2x32xf32, #tpu.memory_space<vmem>>, %arg4: memref<1x8x8x32xf32, #tpu.memory_space<vmem>>) attributes {dimension_semantics = [#tpu.dimension_semantics<parallel>], iteration_bounds = array<i64: 2>, scalar_prefetch = 0 : i64, scratch_operands = 0 : i64, tpu.core_type = #tpu.core_type<tc>, window_params = [{transform_indices = @transform_0, window_bounds = array<i64: 1, 8, 8, 32>}, {transform_indices = @transform_1, window_bounds = array<i64: 1, 8, 8, 32>}, {pipeline_mode = #tpu.pipeline_mode<synchronous>, transform_indices = @transform_2, window_bounds = array<i64: 2, 32>}, {transform_indices = @transform_3, window_bounds = array<i64: 1, 8, 8, 32>}]} {
    %c0 = arith.constant 0 : index
    %c0_0 = arith.constant 0 : index
    %c0_1 = arith.constant 0 : index
    %c0_2 = arith.constant 0 : index
    %0 = vector.load %arg1[%c0, %c0_0, %c0_1, %c0_2] : memref<1x8x8x32xf32, #tpu.memory_space<vmem>>, vector<1x8x8x32xf32>
    %1 = vector.shape_cast %0 : vector<1x8x8x32xf32> to vector<64x32xf32>
    %c0_3 = arith.constant 0 : index
    %c0_4 = arith.constant 0 : index
    %2 = vector.load %arg3[%c0_3, %c0_4] : memref<2x32xf32, #tpu.memory_space<vmem>>, vector<1x32xf32>
    %3 = vector.broadcast %2 : vector<1x32xf32> to vector<64x32xf32>
    %4 = arith.mulf %1, %3 : vector<64x32xf32>
    %c1 = arith.constant 1 : index
    %c0_5 = arith.constant 0 : index
    %5 = vector.load %arg3[%c1, %c0_5] : memref<2x32xf32, #tpu.memory_space<vmem>>, vector<1x32xf32>
    %6 = vector.broadcast %5 : vector<1x32xf32> to vector<64x32xf32>
    %7 = arith.addf %4, %6 : vector<64x32xf32>
    %c0_6 = arith.constant 0 : index
    %c0_7 = arith.constant 0 : index
    %c0_8 = arith.constant 0 : index
    %c0_9 = arith.constant 0 : index
    %8 = vector.load %arg2[%c0_6, %c0_7, %c0_8, %c0_9] : memref<1x8x8x32xf32, #tpu.memory_space<vmem>>, vector<1x8x8x32xf32>
    %9 = vector.shape_cast %8 : vector<1x8x8x32xf32> to vector<64x32xf32>
    %10 = arith.addf %7, %9 : vector<64x32xf32>
    %cst = arith.constant 0.000000e+00 : f32
    %11 = vector.broadcast %cst : f32 to vector<64x32xf32>
    %12 = arith.maximumf %10, %11 : vector<64x32xf32>
    %13 = vector.shape_cast %12 : vector<64x32xf32> to vector<1x8x8x32xf32>
    %c0_10 = arith.constant 0 : index
    %c0_11 = arith.constant 0 : index
    %c0_12 = arith.constant 0 : index
    %c0_13 = arith.constant 0 : index
    %14 = vector.load %arg4[%c0_10, %c0_11, %c0_12, %c0_13] : memref<1x8x8x32xf32, #tpu.memory_space<vmem>>, vector<1x8x8x32xf32>
    tpu.vector_store %arg4[%c0_10, %c0_11, %c0_12, %c0_13], %13 {strides = array<i32>} : memref<1x8x8x32xf32, #tpu.memory_space<vmem>>, vector<1x8x8x32xf32>,
    return
  }
  func.func @transform_0(%arg0: i32) -> (i32, i32, i32, i32) {
    %c0_i32 = arith.constant 0 : i32
    %c0_i32_0 = arith.constant 0 : i32
    %c0_i32_1 = arith.constant 0 : i32
    %c0_i32_2 = arith.constant 0 : i32
    return %arg0, %c0_i32, %c0_i32_0, %c0_i32_1 : i32, i32, i32, i32
  }
  func.func @transform_1(%arg0: i32) -> (i32, i32, i32, i32) {
    %c0_i32 = arith.constant 0 : i32
    %c0_i32_0 = arith.constant 0 : i32
    %c0_i32_1 = arith.constant 0 : i32
    %c0_i32_2 = arith.constant 0 : i32
    return %arg0, %c0_i32, %c0_i32_0, %c0_i32_1 : i32, i32, i32, i32
  }
  func.func @transform_2(%arg0: i32) -> (i32, i32) {
    %c0_i32 = arith.constant 0 : i32
    %c0_i32_0 = arith.constant 0 : i32
    %c0_i32_1 = arith.constant 0 : i32
    return %c0_i32, %c0_i32_0 : i32, i32
  }
  func.func @transform_3(%arg0: i32) -> (i32, i32, i32, i32) {
    %c0_i32 = arith.constant 0 : i32
    %c0_i32_0 = arith.constant 0 : i32
    %c0_i32_1 = arith.constant 0 : i32
    %c0_i32_2 = arith.constant 0 : i32
    return %arg0, %c0_i32, %c0_i32_0, %c0_i32_1 : i32, i32, i32, i32
  }
}

</mosaic_0001>

<bundles_post_ra>
// kernel: bottleneck_forward.4
= control target key start
LH: loop header
LB: loop body
LE: loop exit
PB: predicated region body
PF: predicated region fallthrough
CT: control target
= control target key end

     0   :  { %9 = vsyncpa [#allocation3], 0  ;;  %s785_s0 = inlined_call_operand.hbm [shape: f32[2,8,8,32], index: 0, kind: input, shape index: {}]   ;;  %s786_s1 = inlined_call_operand.vmem [shape: bf16[32,8], index: 1, kind: input, shape index: {}]   ;;  %s787_s2 = inlined_call_operand.vmem [shape: f32[2,8,8,8], index: 2, kind: output, shape index: {0}]   ;;  %s788_s3 = inlined_call_operand.vmem [shape: f32[2,2,8], index: 3, kind: output, shape index: {1}]  }
   0x1   :  { %11 = vsyncpa [#allocation3 + $0x1], 0  ;;  %s643_s12 = smov 0   ;;  %s645_s13 = smov 0  }
   0x2   :  { %s647_s14 = smov 0   ;;  %s649_s15 = smov 0  }
   0x3 LB: > { %s662_s16 = sadd.s32 4294967295, %s618_s15   ;;  %s665_s17 = sadd.s32 1, %s618_s15   ;;  %s618_s15 = sphi %s649_s15, %s797_s15   ;;  %s614_s14 = sphi %s647_s14, %s796_s14   ;;  %s610_s13 = sphi %s645_s13, %s795_s13   ;;  %s606_s12 = sphi %s643_s12, %s794_s12  }
   0x4   : > { %s21_s18 = ssub.s32 %s618_s15, %s665_s17  ;;  %s24_s19 = sadd.s32 1, %s614_s14 }
   0x5   : > { %p22_p0 = scmp.eq.s32.totalorder %s21_s18, 0  ;;  %p31_p1 = scmp.ne.s32.totalorder %s614_s14, %s610_s13 }
   0x6   : > { %p32_p2 = scmp.eq.s32.totalorder %s618_s15, 0  ;;  %p37_p3 = scmp.ne.s32.totalorder %s610_s13, %s606_s12 }
   0x7   : > { %s675_s20 = scalar_select %p22_p0, %s614_s14, %s24_s19  }
   0x8   : > { %p33_p4 = por %p32_p2, %p31_p1  ;;  %p38_p5 = scmp.eq.s32.totalorder %s662_s16, 0 }
   0x9   : > { %p519_p6 = scmp.lt.s32.totalorder %s618_s15, 2  ;;  %s137_s22 = sand.u32 1, %s614_s14  }
   0xa   : > { %p679_p7 = por %p38_p5, %p37_p3  ;;  %s473_s23 = sshll.u32 %s137_s22, 6 }
   0xb   : > { %s489_s24 = sshll.u32 %s618_s15, 10  ;;  %s141_s28 = scalar_lea.vmem [#allocation2], %s473_s23 }
   0xc   : > { %s790_s21 = scalar_select %p679_p7, 1, 0 }
   0xd   : > { %s688_s27 = scalar_lea.hbm %s785_s0, %s489_s24  ;;  %s148_s29 = sshll.u32 %s141_s28, 4  ;;  %s690_s29 = int_to_ptr.vmem [resolvable:$true] %s148_s29 }
   0xe   : > { %p692_p8 = pnand %p519_p6, %p33_p4  ;;  %s697_s4 = scalar_lea.sflag [#allocation3], %s137_s22 }
   0xf   : > { %s556_s5 = scalar_lea.hbm %s688_s27, 1024  ;;  %s561_s8 = scalar_lea.hbm %s785_s0, 2048 }
  0x10   : > { %p557_p10 = scmp.ne.s32.totalorder %s688_s27, %s556_s5  ;;  %p558_p11 = pneg %p692_p8 }
  0x11   : > { %p562_p0 = scmp.lt.s32.totalorder %s688_s27, %s785_s0  ;;  %p563_p1 = scmp.lt.s32.totalorder %s561_s8, %s556_s5 }
  0x12   : > { %p559_p12 = pnand %p558_p11, %p557_p10 }
  0x13   : > { %p564_p2 = por %p563_p1, %p562_p0 }
  0x14   : > { %p560_p13 = pneg %p559_p12 }
  0x16   : > { %p565_p3 = pnand %p564_p2, %p560_p13 }
  0x18   : > { %568 = shalt.err (!%p565_p3)
}
  0x19   : > { %s569_s11 = scalar_lea.vmem %s690_s29, 1024  ;;  %s620_s12 = smov [#allocation2]  }
  0x1a   : > { %p570_p4 = scmp.ne.s32.totalorder %s690_s29, %s569_s11  ;;  %s574_s18 = sshll.u32 %s620_s12, 4  ;;  %s575_s18 = int_to_ptr.vmem [resolvable:$false] %s574_s18 }
  0x1b   : > { %s576_s19 = scalar_lea.vmem %s575_s18, 2048  ;;  %p577_p10 = scmp.lt.s32.totalorder %s690_s29, %s575_s18 }
  0x1c   : > { %p572_p5 = pnand %p570_p4, %p558_p11  ;;  %p578_p12 = scmp.lt.s32.totalorder %s576_s19, %s569_s11 }
  0x1e   : > { %p573_p6 = pneg %p572_p5  ;;  %p579_p9 = por %p578_p12, %p577_p10 }
  0x20   : > { %p580_p7 = pnand %p579_p9, %p573_p6 }
  0x22   : > { %583 = shalt.err (!%p580_p7)
}
  0x23   : > { %s621_s22 = smov 128   ;;  %s622_s23 = smov 8  }
  0x24   : > { %518 = dma.hbm_to_vmem [thread:$0]  (!%p692_p8), %s688_s27, 1024, %s690_s29, %s697_s4, %s621_s22, %s621_s22, %s622_s23  }
  0x25   : > { %p156_p11 = scmp.lt.s32.totalorder %s618_s15, 3  ;;  %p792_p13 = scmp.ge.s32.totalorder %s618_s15, 1 }
  0x27   : > { %p157_p0 = pnand %p792_p13, %p156_p11 }
  0x28   : > { %s162_s24 = sand.u32 (!%p157_p0), 1, %s610_s13   ;;  %p793_p7 = scmp.ne.s32.totalorder (!%p157_p0), %s790_s21, 0 }
  0x29   : > { %160 = sbr.rel (%p157_p0) target bundleno = 286 (0x11e), region = 28  ;;  %s477_s25 = sshll.u32 (!%p157_p0), %s162_s24, 6 }
  0x2a   : > { %s163_s26 = scalar_lea.sflag (!%p157_p0), [#allocation3], %s162_s24  ;;  %s166_s28 = scalar_lea.vmem (!%p157_p0), [#allocation2], %s477_s25 }
  0x2e   : > { %601 = dma.done.wait (%p793_p7), %s163_s26, 1024  }
  0x2f   : > { %603 = vsyncadd (%p793_p7), %s163_s26, 4294966272  ;;  %v554_v0 = vld [vmem:[%s786_s1 + $0x8] sm:$0xff]   ;;  %v555_v1 = vld [vmem:[%s786_s1] sm:$0xff]   ;;  %vm231_vm0 = vcmask 261120   ;;  %p193_p8 = scmp.lt.s32.totalorder %s662_s16, 1  ;;  %vm309_vm1 = vcmask 64512  }
  0x30   : > { %497 = vmatprep.subr.bf16.mxu0 %v554_v0  ;;  %509 = vmatprep.subr.bf16.mxu1 %v554_v0  ;;  %v203_v2 = vld [vmem:[%s166_s28] sm:$0xff]  ;;  %v204_v3 = vld [vmem:[%s166_s28 + $0x8] sm:$0xff]  ;;  %v205_v4 = vld [vmem:[%s166_s28 + $0x10] sm:$0xff]  ;;  %vm360_vm2 = vcmask 1040384   ;;  %vm362_vm3 = vcmask 58368  }
  0x31   : > { %498 = vmatpush3.bf16.msra.mxu0 %v554_v0  ;;  %511 = vmatpush3.bf16.msra.mxu1 %v554_v0  ;;  %v211_v5 = vpack.c.bf16 %v204_v3, %v203_v2  ;;  %v206_v6 = vld [vmem:[%s166_s28 + $0x18] sm:$0xff]  ;;  %v207_v7 = vld [vmem:[%s166_s28 + $0x20] sm:$0xff]  ;;  %v208_v8 = vld [vmem:[%s166_s28 + $0x28] sm:$0xff]  ;;  %s799_s16 = smov (!%p193_p8, %s662_s16), 1 }
  0x32   : > { %499 = vmatprep.subr.bf16.mxu0 %v555_v1  ;;  %510 = vmatprep.subr.bf16.mxu1 %v555_v1  ;;  %v213_v9 = vpack.c.bf16 %v208_v8, %v207_v7  ;;  %v209_v10 = vld [vmem:[%s166_s28 + $0x30] sm:$0xff]  ;;  %v210_v11 = vld [vmem:[%s166_s28 + $0x38] sm:$0xff]  ;;  %v212_v12 = vpack.c.bf16 %v206_v6, %v205_v4  ;;  %s490_s15 = sshll.u32 %s799_s16, 6  ;;  %s480_s7 = sshll.u32 %s799_s16, 1 }
  0x33   : > { %501 = vmatprep.mubr.msk.bf16.mxu0 %vm231_vm0, %v211_v5  ;;  %v214_v13 = vpack.c.bf16 %v210_v11, %v209_v10  ;;  %s197_s4 = scalar_lea.vmem %s787_s2, %s490_s15  ;;  %s201_s10 = scalar_lea.vmem %s788_s3, %s480_s7 }
  0x34   : > { %505 = vmatprep.mubr.msk.bf16.mxu1 %vm231_vm0, %v213_v9 }
  0x35   : > { %500 = vmatpush3.bf16.msra.mxu0 %v555_v1  ;;  %512 = vmatpush3.bf16.msra.mxu1 %v555_v1 }
  0x38   : > { %502 = vmatmul.mubr.msk.bf16.vlgmr.msra.gmra.mxu0 %vm231_vm0, %v212_v12  ;;  %506 = vmatmul.mubr.msk.bf16.vlgmr.msra.gmra.mxu1 %vm231_vm0, %v214_v13 }
  0xf8   : > { %v503_v14 = vpop.f32.mrf.mxu0  ;;  %v507_v15 = vpop.f32.mrf.mxu1 }
  0xf9   : > { %366 = vst.msk [vmem:[%s197_s4 + $0x10] sm:$0xff] %vm309_vm1, %v503_v14  ;;  %370 = vst.msk [vmem:[%s197_s4 + $0x30] sm:$0xff] %vm309_vm1, %v507_v15  ;;  %v333_v23 = vmul.f32 %v503_v14, %v503_v14  ;;  %v313_v28 = vsel %vm309_vm1, %v503_v14, 0.0  ;;  %v337_v44 = vmul.f32 %v507_v15, %v507_v15  ;;  %v321_v49 = vsel %vm309_vm1, %v507_v15, 0.0 }
  0xfa   : > { %v278_v16 = vpop.f32.mrf.mxu0  ;;  %v294_v17 = vpop.f32.mrf.mxu1 }
  0xfb   : > { %364 = vst.msk [vmem:[%s197_s4] sm:$0xff] %vm309_vm1, %v278_v16  ;;  %368 = vst.msk [vmem:[%s197_s4 + $0x20] sm:$0xff] %vm309_vm1, %v294_v17  ;;  %v331_v20 = vmul.f32 %v278_v16, %v278_v16  ;;  %v310_v24 = vsel %vm309_vm1, %v278_v16, 0.0  ;;  %v342_v34 = vsel %vm309_vm1, %v333_v23, 0.0  ;;  %v335_v36 = vmul.f32 %v294_v17, %v294_v17 }
  0xfc   : > { %v504_v18 = vpop.f32.mrf.mxu0  ;;  %v508_v19 = vpop.f32.mrf.mxu1  ;;  %v317_v40 = vsel %vm309_vm1, %v294_v17, 0.0  ;;  %v350_v54 = vsel %vm309_vm1, %v337_v44, 0.0 }
  0xfd   : > { %367 = vst.msk [vmem:[%s197_s4 + $0x18] sm:$0xff] %vm309_vm1, %v504_v18  ;;  %371 = vst.msk [vmem:[%s197_s4 + $0x38] sm:$0xff] %vm309_vm1, %v508_v19  ;;  %v339_v29 = vsel %vm309_vm1, %v331_v20, 0.0  ;;  %v334_v30 = vmul.f32 %v504_v18, %v504_v18  ;;  %v315_v35 = vsel %vm309_vm1, %v504_v18, 0.0  ;;  %v346_v45 = vsel %vm309_vm1, %v335_v36, 0.0 }
  0xfe   : > { %v281_v21 = vpop.f32.mrf.mxu0  ;;  %v297_v22 = vpop.f32.mrf.mxu1  ;;  %v338_v50 = vmul.f32 %v508_v19, %v508_v19  ;;  %v323_v55 = vsel %vm309_vm1, %v508_v19, 0.0 }
  0xff   : > { %v311_v25 = vsel %vm309_vm1, %v281_v21, 0.0  ;;  %v332_v26 = vmul.f32 %v281_v21, %v281_v21  ;;  %365 = vst.msk [vmem:[%s197_s4 + $0x8] sm:$0xff] %vm309_vm1, %v281_v21  ;;  %369 = vst.msk [vmem:[%s197_s4 + $0x28] sm:$0xff] %vm309_vm1, %v297_v22  ;;  %v344_v39 = vsel %vm309_vm1, %v334_v30, 0.0  ;;  %v336_v41 = vmul.f32 %v297_v22, %v297_v22 }
 0x100   : > { %v312_v27 = vadd.f32 %v311_v25, %v310_v24  ;;  %v319_v46 = vsel %vm309_vm1, %v297_v22, 0.0  ;;  %v352_v58 = vsel %vm309_vm1, %v338_v50, 0.0 }
 0x101   : > { %v340_v31 = vsel %vm309_vm1, %v332_v26, 0.0  ;;  %v348_v51 = vsel %vm309_vm1, %v336_v41, 0.0 }
 0x102   : > { %v314_v32 = vadd.f32 %v313_v28, %v312_v27  ;;  %v341_v33 = vadd.f32 %v340_v31, %v339_v29 }
 0x104   : > { %v343_v37 = vadd.f32 %v342_v34, %v341_v33  ;;  %v316_v38 = vadd.f32 %v315_v35, %v314_v32 }
 0x106   : > { %v318_v42 = vadd.f32 %v317_v40, %v316_v38  ;;  %v345_v43 = vadd.f32 %v344_v39, %v343_v37 }
 0x108   : > { %v320_v47 = vadd.f32 %v319_v46, %v318_v42  ;;  %v347_v48 = vadd.f32 %v346_v45, %v345_v43 }
 0x10a   : > { %v322_v52 = vadd.f32 %v321_v49, %v320_v47  ;;  %v349_v53 = vadd.f32 %v348_v51, %v347_v48 }
 0x10c   : > { %v324_v56 = vadd.f32 %v323_v55, %v322_v52  ;;  %v351_v57 = vadd.f32 %v350_v54, %v349_v53 }
 0x10e   : > { %v325_v59 = vrot.slane %v324_v56, 4  ;;  %v353_v60 = vadd.f32 %v352_v58, %v351_v57 }
 0x110   : > { %v326_v61 = vadd.f32 %v325_v59, %v324_v56  ;;  %v354_v62 = vrot.slane %v353_v60, 4 }
 0x112   : > { %v327_v63 = vrot.slane %v326_v61, 2  ;;  %v355_v0 = vadd.f32 %v354_v62, %v353_v60 }
 0x114   : > { %v328_v1 = vadd.f32 %v327_v63, %v326_v61  ;;  %v356_v2 = vrot.slane %v355_v0, 2 }
 0x116   : > { %v329_v3 = vrot.slane %v328_v1, 1  ;;  %v357_v4 = vadd.f32 %v356_v2, %v355_v0 }
 0x118   : > { %v358_v5 = vrot.slane %v357_v4, 1  ;;  %v330_v6 = vadd.f32 %v329_v3, %v328_v1 }
 0x11a   : > { %v359_v7 = vadd.f32 %v358_v5, %v357_v4 }
 0x11c   : > { %v361_v8 = vsel %vm360_vm2, %v330_v6, %v359_v7 }
 0x11d   : > { %363 = vst.msk [vmem:[%s201_s10] sm:$0x3] %vm362_vm3, %v361_v8 }
 0x11e PF: > { %p14_p9 = scmp.ge.s32.totalorder %s665_s17, 4   ;;  %s794_s12 = smov %s610_s13 }
 0x11f   : > { %s795_s13 = smov %s614_s14  ;;  %s796_s14 = smov %s675_s20 }
 0x120   : > { %s797_s15 = smov %s665_s17  ;;  %16 = sbr.rel (!%p14_p9) target bundleno = 3 (0x3), region = 80 }
 0x125   :  { %407 = vsyncpa [#allocation3], 1 }
 0x126   :  { %409 = vsyncpa [#allocation3 + $0x1], 1 }

// kernel: bottleneck_forward.6
= control target key start
LH: loop header
LB: loop body
LE: loop exit
PB: predicated region body
PF: predicated region fallthrough
CT: control target
= control target key end

     0   :  { %s568_s15 = smov 0   ;;  %s633_s0 = inlined_call_operand.vmem [shape: f32[2,8,8,8], index: 0, kind: input, shape index: {}]   ;;  %s634_s1 = inlined_call_operand.vmem [shape: f32[2,8], index: 1, kind: input, shape index: {}]   ;;  %s635_s2 = inlined_call_operand.vmem [shape: bf16[8,32], index: 2, kind: input, shape index: {}]   ;;  %s636_s3 = inlined_call_operand.vmem [shape: f32[2,8,8,32], index: 3, kind: output, shape index: {0}]   ;;  %s637_s4 = inlined_call_operand.vmem [shape: f32[2,2,32], index: 4, kind: output, shape index: {1}]  }
   0x1 LB: > { %s488_s16 = sadd.s32 4294967295, %s541_s15   ;;  %p492_p0 = scmp.ge.s32.totalorder %s541_s15, 1  ;;  %s541_s15 = sphi %s568_s15, %s15_s15  }
   0x2   : > { %p165_p1 = scmp.lt.s32.totalorder %s541_s15, 3 }
   0x4   : > { %p166_p2 = pnand %p492_p0, %p165_p1 }
   0x5   : > { %p195_p3 = scmp.lt.s32.totalorder (!%p166_p2), %s488_s16, 1 }
   0x6   : > { %169 = sbr.rel (%p166_p2) target bundleno = 254 (0xfe), region = 32 }
   0xb   : > { %v256_v0 = vld [vmem:[%s635_s2] sm:$0xf]  ;;  %vm270_vm0 = vcmask 1043456   ;;  %s639_s16 = smov (!%p195_p3, %s488_s16), 1  ;;  %vm257_vm1 = vcmask 64512   ;;  %vm339_vm2 = vcmask 261120  }
   0xc   : > { %525 = vmatprep.subr.msk.bf16.mxu0 %vm270_vm0, %v256_v0  ;;  %v272_v1 = vsel %vm270_vm0, %v256_v0, 0  ;;  %526 = vmatprep.subr.msk.bf16.mxu1 %vm270_vm0, %v256_v0  ;;  %s506_s19 = sshll.u32 %s639_s16, 6  ;;  %v498_v2 = vld [vmem:[%s634_s1] ss:$0 sm:$0xff]  ;;  %v499_v3 = vld [vmem:[%s634_s1 + $0x1] ss:$0 sm:$0xff] }
   0xd   : > { %514 = vmatpush3.bf16.msra.mxu0 %v272_v1  ;;  %524 = vmatpush3.bf16.msra.mxu1 %v272_v1  ;;  %s199_s24 = scalar_lea.vmem %s633_s0, %s506_s19  ;;  %s204_s29 = scalar_lea.vmem %s636_s3, %s506_s19  ;;  %vm390_vm3 = vcmask 1040384   ;;  %vm392_vm4 = vcmask 254976  }
   0xe   : > { %v210_v4 = vld [vmem:[%s199_s24] sm:$0xff]  ;;  %v211_v5 = vld [vmem:[%s199_s24 + $0x8] sm:$0xff]  ;;  %v212_v6 = vld [vmem:[%s199_s24 + $0x10] sm:$0xff]  ;;  %s497_s30 = sshll.u32 %s639_s16, 1 }
   0xf   : > { %v223_v7 = vmul.f32 %v498_v2, %v210_v4  ;;  %v224_v8 = vmul.f32 %v498_v2, %v211_v5  ;;  %v213_v9 = vld [vmem:[%s199_s24 + $0x18] sm:$0xff]  ;;  %v225_v10 = vmul.f32 %v498_v2, %v212_v6  ;;  %v214_v11 = vld [vmem:[%s199_s24 + $0x20] sm:$0xff]  ;;  %v215_v12 = vld [vmem:[%s199_s24 + $0x28] sm:$0xff]  ;;  %s208_s7 = scalar_lea.vmem %s637_s4, %s497_s30 }
  0x10   : > { %v226_v13 = vmul.f32 %v498_v2, %v213_v9  ;;  %v227_v14 = vmul.f32 %v498_v2, %v214_v11  ;;  %v228_v15 = vmul.f32 %v498_v2, %v215_v12  ;;  %v216_v16 = vld [vmem:[%s199_s24 + $0x30] sm:$0xff]  ;;  %v217_v17 = vld [vmem:[%s199_s24 + $0x38] sm:$0xff] }
  0x11   : > { %v236_v18 = vadd.f32 %v499_v3, %v223_v7  ;;  %v237_v19 = vadd.f32 %v499_v3, %v224_v8  ;;  %v238_v20 = vadd.f32 %v499_v3, %v225_v10  ;;  %v229_v21 = vmul.f32 %v498_v2, %v216_v16 }
  0x12   : > { %v239_v22 = vadd.f32 %v499_v3, %v226_v13  ;;  %v240_v23 = vadd.f32 %v499_v3, %v227_v14  ;;  %v241_v24 = vadd.f32 %v499_v3, %v228_v15  ;;  %v230_v25 = vmul.f32 %v498_v2, %v217_v17 }
  0x13   : > { %v244_v26 = vmax.f32 %v236_v18, 0.0  ;;  %v245_v27 = vmax.f32 %v237_v19, 0.0  ;;  %v246_v28 = vmax.f32 %v238_v20, 0.0  ;;  %v242_v29 = vadd.f32 %v499_v3, %v229_v21 }
  0x14   : > { %v247_v30 = vmax.f32 %v239_v22, 0.0  ;;  %v248_v31 = vmax.f32 %v240_v23, 0.0  ;;  %v249_v32 = vmax.f32 %v241_v24, 0.0  ;;  %v243_v33 = vadd.f32 %v499_v3, %v230_v25 }
  0x15   : > { %v252_v34 = vpack.c.bf16 %v245_v27, %v244_v26  ;;  %v250_v35 = vmax.f32 %v242_v29, 0.0 }
  0x16   : > { %v253_v36 = vpack.c.bf16 %v247_v30, %v246_v28  ;;  %v254_v37 = vpack.c.bf16 %v249_v32, %v248_v31  ;;  %v251_v38 = vmax.f32 %v243_v33, 0.0 }
  0x17   : > { %515 = vmatprep.mubr.msk.bf16.mxu0 %vm257_vm1, %v252_v34 }
  0x18   : > { %516 = vmatmul.mubr.msk.bf16.vlgmr.msra.gmra.mxu0 %vm257_vm1, %v253_v36  ;;  %519 = vmatprep.mubr.msk.bf16.mxu1 %vm257_vm1, %v254_v37  ;;  %v255_v39 = vpack.c.bf16 %v251_v38, %v250_v35 }
  0x1a   : > { %520 = vmatmul.mubr.msk.bf16.vlgmr.msra.gmra.mxu1 %vm257_vm1, %v255_v39 }
  0xd8   : > { %v517_v40 = vpop.f32.mrf.mxu0 }
  0xd9   : > { %396 = vst.msk [vmem:[%s204_s29 + $0x10] sm:$0xff] %vm339_vm2, %v517_v40  ;;  %v363_v48 = vmul.f32 %v517_v40, %v517_v40  ;;  %v343_v54 = vsel %vm339_vm2, %v517_v40, 0.0 }
  0xda   : > { %v308_v41 = vpop.f32.mrf.mxu0  ;;  %v521_v42 = vpop.f32.mrf.mxu1 }
  0xdb   : > { %394 = vst.msk [vmem:[%s204_s29] sm:$0xff] %vm339_vm2, %v308_v41  ;;  %400 = vst.msk [vmem:[%s204_s29 + $0x30] sm:$0xff] %vm339_vm2, %v521_v42  ;;  %v361_v45 = vmul.f32 %v308_v41, %v308_v41  ;;  %v340_v49 = vsel %vm339_vm2, %v308_v41, 0.0  ;;  %v372_v60 = vsel %vm339_vm2, %v363_v48, 0.0  ;;  %v367_v6 = vmul.f32 %v521_v42, %v521_v42 }
  0xdc   : > { %v518_v43 = vpop.f32.mrf.mxu0  ;;  %v324_v44 = vpop.f32.mrf.mxu1  ;;  %v351_v11 = vsel %vm339_vm2, %v521_v42, 0.0 }
  0xdd   : > { %397 = vst.msk [vmem:[%s204_s29 + $0x18] sm:$0xff] %vm339_vm2, %v518_v43  ;;  %398 = vst.msk [vmem:[%s204_s29 + $0x20] sm:$0xff] %vm339_vm2, %v324_v44  ;;  %v369_v55 = vsel %vm339_vm2, %v361_v45, 0.0  ;;  %v364_v56 = vmul.f32 %v518_v43, %v518_v43  ;;  %v345_v61 = vsel %vm339_vm2, %v518_v43, 0.0  ;;  %v365_v62 = vmul.f32 %v324_v44, %v324_v44 }
  0xde   : > { %v311_v46 = vpop.f32.mrf.mxu0  ;;  %v522_v47 = vpop.f32.mrf.mxu1  ;;  %v347_v2 = vsel %vm339_vm2, %v324_v44, 0.0  ;;  %v380_v16 = vsel %vm339_vm2, %v367_v6, 0.0 }
  0xdf   : > { %v341_v50 = vsel %vm339_vm2, %v311_v46, 0.0  ;;  %v362_v51 = vmul.f32 %v311_v46, %v311_v46  ;;  %395 = vst.msk [vmem:[%s204_s29 + $0x8] sm:$0xff] %vm339_vm2, %v311_v46  ;;  %401 = vst.msk [vmem:[%s204_s29 + $0x38] sm:$0xff] %vm339_vm2, %v522_v47  ;;  %v374_v1 = vsel %vm339_vm2, %v364_v56, 0.0  ;;  %v376_v7 = vsel %vm339_vm2, %v365_v62, 0.0 }
  0xe0   : > { %v342_v52 = vadd.f32 %v341_v50, %v340_v49  ;;  %v327_v53 = vpop.f32.mrf.mxu1  ;;  %v368_v12 = vmul.f32 %v522_v47, %v522_v47  ;;  %v353_v17 = vsel %vm339_vm2, %v522_v47, 0.0 }
  0xe1   : > { %v370_v57 = vsel %vm339_vm2, %v362_v51, 0.0  ;;  %399 = vst.msk [vmem:[%s204_s29 + $0x28] sm:$0xff] %vm339_vm2, %v327_v53  ;;  %v366_v3 = vmul.f32 %v327_v53, %v327_v53  ;;  %v349_v8 = vsel %vm339_vm2, %v327_v53, 0.0 }
  0xe2   : > { %v344_v58 = vadd.f32 %v343_v54, %v342_v52  ;;  %v371_v59 = vadd.f32 %v370_v57, %v369_v55  ;;  %v382_v20 = vsel %vm339_vm2, %v368_v12, 0.0 }
  0xe3   : > { %v378_v13 = vsel %vm339_vm2, %v366_v3, 0.0 }
  0xe4   : > { %v373_v63 = vadd.f32 %v372_v60, %v371_v59  ;;  %v346_v0 = vadd.f32 %v345_v61, %v344_v58 }
  0xe6   : > { %v348_v4 = vadd.f32 %v347_v2, %v346_v0  ;;  %v375_v5 = vadd.f32 %v374_v1, %v373_v63 }
  0xe8   : > { %v350_v9 = vadd.f32 %v349_v8, %v348_v4  ;;  %v377_v10 = vadd.f32 %v376_v7, %v375_v5 }
  0xea   : > { %v352_v14 = vadd.f32 %v351_v11, %v350_v9  ;;  %v379_v15 = vadd.f32 %v378_v13, %v377_v10 }
  0xec   : > { %v354_v18 = vadd.f32 %v353_v17, %v352_v14  ;;  %v381_v19 = vadd.f32 %v380_v16, %v379_v15 }
  0xee   : > { %v355_v21 = vrot.slane %v354_v18, 4  ;;  %v383_v22 = vadd.f32 %v382_v20, %v381_v19 }
  0xf0   : > { %v356_v23 = vadd.f32 %v355_v21, %v354_v18  ;;  %v384_v24 = vrot.slane %v383_v22, 4 }
  0xf2   : > { %v357_v25 = vrot.slane %v356_v23, 2  ;;  %v385_v26 = vadd.f32 %v384_v24, %v383_v22 }
  0xf4   : > { %v358_v27 = vadd.f32 %v357_v25, %v356_v23  ;;  %v386_v28 = vrot.slane %v385_v26, 2 }
  0xf6   : > { %v359_v29 = vrot.slane %v358_v27, 1  ;;  %v387_v30 = vadd.f32 %v386_v28, %v385_v26 }
  0xf8   : > { %v388_v31 = vrot.slane %v387_v30, 1  ;;  %v360_v32 = vadd.f32 %v359_v29, %v358_v27 }
  0xfa   : > { %v389_v33 = vadd.f32 %v388_v31, %v387_v30 }
  0xfc   : > { %v391_v34 = vsel %vm390_vm3, %v360_v32, %v389_v33 }
  0xfd   : > { %393 = vst.msk [vmem:[%s208_s7] sm:$0x3] %vm392_vm4, %v391_v34 }
  0xfe PF: > { %s15_s15 = sadd.s32 1, %s541_s15  }
  0xff   : > { %p12_p4 = scmp.ge.s32.totalorder %s15_s15, 4  }
 0x101   :  { %14 = sbr.rel (!%p12_p4) target bundleno = 1 (0x1), region = 74 }

// kernel: bottleneck_forward.7
= control target key start
LH: loop header
LB: loop body
LE: loop exit
PB: predicated region body
PF: predicated region fallthrough
CT: control target
= control target key end

     0   :  { %8 = vsyncpa [#allocation3], 0  ;;  %s625_s0 = inlined_call_operand.vmem [shape: f32[2,8,8,32], index: 0, kind: input, shape index: {}]   ;;  %s626_s1 = inlined_call_operand.vmem [shape: f32[2,8,8,32], index: 1, kind: input, shape index: {}]   ;;  %s627_s2 = inlined_call_operand.vmem [shape: f32[2,32], index: 2, kind: input, shape index: {}]   ;;  %s628_s3 = inlined_call_operand.hbm [shape: f32[2,8,8,32], index: 3, kind: output, shape index: {}]  }
   0x1   :  { %10 = vsyncpa [#allocation3 + $0x1], 0  ;;  %s489_s12 = smov 0   ;;  %s491_s13 = smov 0  }
   0x2   :  { %s493_s14 = smov 0   ;;  %s495_s15 = smov 0  }
   0x3 LB: > { %s510_s16 = sadd.s32 4294967295, %s464_s15   ;;  %s344_s17 = sadd.s32 4294967294, %s464_s15   ;;  %s464_s15 = sphi %s495_s15, %s634_s15   ;;  %s460_s14 = sphi %s493_s14, %s633_s14   ;;  %s456_s13 = sphi %s491_s13, %s632_s13   ;;  %s452_s12 = sphi %s489_s12, %s631_s12  }
   0x4   : > { %s514_s18 = sadd.s32 1, %s464_s15   ;;  %s96_s19 = sadd.s32 1, %s460_s14 }
   0x5   : > { %s93_s20 = ssub.s32 %s464_s15, %s514_s18  ;;  %p106_p0 = scmp.ne.s32.totalorder %s460_s14, %s456_s13 }
   0x6   : > { %p94_p1 = scmp.eq.s32.totalorder %s93_s20, 0  ;;  %p107_p2 = scmp.eq.s32.totalorder %s510_s16, 1 }
   0x7   : > { %p112_p3 = scmp.ne.s32.totalorder %s456_s13, %s452_s12  ;;  %p113_p4 = scmp.eq.s32.totalorder %s344_s17, 1 }
   0x8   : > { %s525_s21 = scalar_select %p94_p1, %s460_s14, %s96_s19  }
   0x9   : > { %p527_p5 = por %p107_p2, %p106_p0  ;;  %p531_p6 = por %p113_p4, %p112_p3 }
   0xa   : > { %p347_p7 = scmp.ge.s32.totalorder %s464_s15, 1  ;;  %p150_p8 = scmp.lt.s32.totalorder %s464_s15, 3 }
   0xc   : > { %p151_p9 = pnand %p347_p7, %p150_p8 }
   0xd   : > { %p179_p10 = scmp.lt.s32.totalorder (!%p151_p9), %s510_s16, 1  ;;  %s176_s25 = sand.u32 (!%p151_p9), 1, %s456_s13  }
   0xe   : > { %154 = sbr.rel (%p151_p9) target bundleno = 51 (0x33), region = 32  ;;  %s557_s10 = sshll.u32 (!%p151_p9), %s176_s25, 6 }
   0xf   : > { %s178_s11 = scalar_lea.vmem (!%p151_p9), [#allocation2], %s557_s10  ;;  %s362_s19 = sshll.u32 (!%p151_p9), %s510_s16, 10 }
  0x10   : > { %s270_s17 = sshll.u32 (!%p151_p9), %s178_s11, 4  ;;  %s466_s28 = smov (!%p151_p9), [#allocation2]   ;;  %s571_s17 = int_to_ptr.vmem [resolvable:$true] %s270_s17 }
  0x11   : > { %s404_s27 = scalar_lea.vmem (!%p151_p9), %s571_s17, 1024  ;;  %s408_s29 = sshll.u32 (!%p151_p9), %s466_s28, 4  ;;  %s409_s29 = int_to_ptr.vmem [resolvable:$false] %s408_s29 }
  0x12   : > { %p405_p11 = scmp.ne.s32.totalorder (!%p151_p9), %s571_s17, %s404_s27  ;;  %s410_s30 = scalar_lea.vmem (!%p151_p9), %s409_s29, 2048 }
  0x13   : > { %s180_s24 = scalar_select %p179_p10, %s510_s16, 1  ;;  %v353_v0 = vld [vmem:[%s627_s2] ss:$0 sm:$0xff]  ;;  %v354_v2 = vld [vmem:[%s627_s2 + $0x1] ss:$0 sm:$0xff]  ;;  %vm247_vm0 = vcmask 261120  }
  0x14   : > { %p406_p12 = pnand %p405_p11, %p527_p5  ;;  %p411_p0 = scmp.lt.s32.totalorder %s571_s17, %s409_s29 }
  0x15   : > { %s360_s26 = sshll.u32 %s180_s24, 6  ;;  %s578_s24 = scalar_lea.hbm %s628_s3, %s362_s19 }
  0x16   : > { %s183_s4 = scalar_lea.vmem %s625_s0, %s360_s26  ;;  %s549_s7 = scalar_lea.vmem %s626_s1, %s360_s26 }
  0x17   : > { %v189_v1 = vld [vmem:[%s183_s4] sm:$0xff]  ;;  %v190_v3 = vld [vmem:[%s183_s4 + $0x8] sm:$0xff]  ;;  %v191_v7 = vld [vmem:[%s183_s4 + $0x10] sm:$0xff]  ;;  %s585_s26 = scalar_lea.sflag [#allocation3], %s176_s25  ;;  %p407_p13 = pneg %p406_p12 }
  0x18   : > { %v202_v4 = vmul.f32 %v353_v0, %v189_v1  ;;  %v223_v5 = vld [vmem:[%s549_s7] sm:$0xff]  ;;  %v203_v6 = vmul.f32 %v353_v0, %v190_v3  ;;  %v224_v8 = vld [vmem:[%s549_s7 + $0x8] sm:$0xff]  ;;  %v204_v9 = vmul.f32 %v353_v0, %v191_v7  ;;  %v192_v10 = vld [vmem:[%s183_s4 + $0x18] sm:$0xff]  ;;  %p412_p1 = scmp.lt.s32.totalorder %s410_s30, %s404_s27 }
  0x19   : > { %v193_v11 = vld [vmem:[%s183_s4 + $0x20] sm:$0xff]  ;;  %v225_v14 = vld [vmem:[%s549_s7 + $0x10] sm:$0xff]  ;;  %v205_v15 = vmul.f32 %v353_v0, %v192_v10  ;;  %v226_v16 = vld [vmem:[%s549_s7 + $0x18] sm:$0xff] }
  0x1a   : > { %v215_v12 = vadd.f32 %v354_v2, %v202_v4  ;;  %v216_v13 = vadd.f32 %v354_v2, %v203_v6  ;;  %v206_v17 = vmul.f32 %v353_v0, %v193_v11  ;;  %v194_v18 = vld [vmem:[%s183_s4 + $0x28] sm:$0xff]  ;;  %v217_v19 = vadd.f32 %v354_v2, %v204_v9  ;;  %v227_v20 = vld [vmem:[%s549_s7 + $0x20] sm:$0xff]  ;;  %v195_v22 = vld [vmem:[%s183_s4 + $0x30] sm:$0xff]  ;;  %p413_p2 = por %p412_p1, %p411_p0 }
  0x1b   : > { %v207_v21 = vmul.f32 %v353_v0, %v194_v18  ;;  %v196_v23 = vld [vmem:[%s183_s4 + $0x38] sm:$0xff]  ;;  %v218_v26 = vadd.f32 %v354_v2, %v205_v15  ;;  %v228_v28 = vld [vmem:[%s549_s7 + $0x28] sm:$0xff]  ;;  %v208_v31 = vmul.f32 %v353_v0, %v195_v22  ;;  %v229_v37 = vld [vmem:[%s549_s7 + $0x30] sm:$0xff] }
  0x1c   : > { %v231_v24 = vadd.f32 %v223_v5, %v215_v12  ;;  %v232_v25 = vadd.f32 %v224_v8, %v216_v13  ;;  %v219_v27 = vadd.f32 %v354_v2, %v206_v17  ;;  %v233_v29 = vadd.f32 %v225_v14, %v217_v19  ;;  %v230_v38 = vld [vmem:[%s549_s7 + $0x38] sm:$0xff]  ;;  %p414_p3 = pnand %p413_p2, %p407_p13 }
  0x1d   : > { %v220_v30 = vadd.f32 %v354_v2, %v207_v21  ;;  %v209_v32 = vmul.f32 %v353_v0, %v196_v23  ;;  %v234_v35 = vadd.f32 %v226_v16, %v218_v26  ;;  %v221_v41 = vadd.f32 %v354_v2, %v208_v31 }
  0x1e   : > { %v239_v33 = vmax.f32 %v231_v24, 0.0  ;;  %v240_v34 = vmax.f32 %v232_v25, 0.0  ;;  %v235_v36 = vadd.f32 %v227_v20, %v219_v27  ;;  %v241_v39 = vmax.f32 %v233_v29, 0.0 }
  0x1f   : > { %v236_v40 = vadd.f32 %v228_v28, %v220_v30  ;;  %v222_v42 = vadd.f32 %v354_v2, %v209_v32  ;;  %v242_v43 = vmax.f32 %v234_v35, 0.0  ;;  %v237_v46 = vadd.f32 %v229_v37, %v221_v41 }
  0x20   : > { %248 = vst.msk [vmem:[%s178_s11] sm:$0xff] %vm247_vm0, %v239_v33  ;;  %249 = vst.msk [vmem:[%s178_s11 + $0x8] sm:$0xff] %vm247_vm0, %v240_v34  ;;  %v243_v44 = vmax.f32 %v235_v36, 0.0 }
  0x21   : > { %250 = vst.msk [vmem:[%s178_s11 + $0x10] sm:$0xff] %vm247_vm0, %v241_v39  ;;  %v244_v45 = vmax.f32 %v236_v40, 0.0  ;;  %v238_v47 = vadd.f32 %v230_v38, %v222_v42  ;;  %251 = vst.msk [vmem:[%s178_s11 + $0x18] sm:$0xff] %vm247_vm0, %v242_v43  ;;  %v245_v48 = vmax.f32 %v237_v46, 0.0 }
  0x22   : > { %252 = vst.msk [vmem:[%s178_s11 + $0x20] sm:$0xff] %vm247_vm0, %v243_v44 }
  0x23   : > { %253 = vst.msk [vmem:[%s178_s11 + $0x28] sm:$0xff] %vm247_vm0, %v244_v45  ;;  %v246_v49 = vmax.f32 %v238_v47, 0.0  ;;  %254 = vst.msk [vmem:[%s178_s11 + $0x30] sm:$0xff] %vm247_vm0, %v245_v48 }
  0x25   : > { %255 = vst.msk [vmem:[%s178_s11 + $0x38] sm:$0xff] %vm247_vm0, %v246_v49 }
  0x26   : > { %417 = shalt.err (!%p414_p3)
}
  0x27   : > { %s418_s25 = scalar_lea.hbm %s578_s24, 1024  ;;  %s422_s6 = scalar_lea.hbm %s628_s3, 2048 }
  0x28   : > { %p419_p4 = scmp.ne.s32.totalorder %s578_s24, %s418_s25  ;;  %p423_p9 = scmp.lt.s32.totalorder %s578_s24, %s628_s3 }
  0x29   : > { %p424_p10 = scmp.lt.s32.totalorder %s422_s6, %s418_s25 }
  0x2a   : > { %p420_p7 = pnand %p419_p4, %p527_p5 }
  0x2b   : > { %p425_p11 = por %p424_p10, %p423_p9 }
  0x2c   : > { %p421_p8 = pneg %p420_p7 }
  0x2e   : > { %p426_p12 = pnand %p425_p11, %p421_p8 }
  0x30   : > { %429 = shalt.err (!%p426_p12)
}
  0x31   : > { %s467_s9 = smov 128   ;;  %s468_s10 = smov 8  }
  0x32   : > { %363 = dma.vmem_to_hbm [thread:$0]  (%p527_p5), %s571_s17, 1024, %s578_s24, %s585_s26, %s467_s9, %s467_s9, %s468_s10  }
  0x33 PF: > { %p369_p13 = scmp.ge.s32.totalorder %s464_s15, 2  ;;  %s285_s11 = sand.u32 1, %s452_s12  }
  0x34   : > { %s286_s19 = scalar_lea.sflag [#allocation3], %s285_s11 }
  0x35   : > { %p366_p0 = pnand %p369_p13, %p531_p6 }
  0x37   : > { %p367_p1 = pneg %p366_p0 }
  0x39   : > { %447 = dma.done.wait (%p367_p1), %s286_s19, 1024  }
  0x3a   : > { %449 = vsyncadd (%p367_p1), %s286_s19, 4294966272  ;;  %p13_p2 = scmp.ge.s32.totalorder %s514_s18, 4   ;;  %s631_s12 = smov %s456_s13 }
  0x3b   : > { %s632_s13 = smov %s460_s14  ;;  %s633_s14 = smov %s525_s21 }
  0x3c   : > { %s634_s15 = smov %s514_s18  ;;  %15 = sbr.rel (!%p13_p2) target bundleno = 3 (0x3), region = 70 }
  0x41   :  { %291 = vsyncpa [#allocation3], 1 }
  0x42   :  { %293 = vsyncpa [#allocation3 + $0x1], 1 }

// kernel: bottleneck_forward.5
= control target key start
LH: loop header
LB: loop body
LE: loop exit
PB: predicated region body
PF: predicated region fallthrough
CT: control target
= control target key end

     0   :  { %s1103_s15 = smov 0   ;;  %s1384_s0 = inlined_call_operand.vmem [shape: f32[2,8,8,8], index: 0, kind: input, shape index: {}]   ;;  %s1385_s1 = inlined_call_operand.vmem [shape: f32[2,8], index: 1, kind: input, shape index: {}]   ;;  %s1386_s2 = inlined_call_operand.vmem [shape: bf16[72,8], index: 2, kind: input, shape index: {}]   ;;  %s1387_s3 = inlined_call_operand.vmem [shape: f32[2,8,8,8], index: 3, kind: output, shape index: {0}]   ;;  %s1388_s4 = inlined_call_operand.vmem [shape: f32[2,2,8], index: 4, kind: output, shape index: {1}]  }
   0x1 LB: > { %s975_s16 = sadd.s32 4294967295, %s1067_s15   ;;  %p979_p0 = scmp.ge.s32.totalorder %s1067_s15, 1  ;;  %s1067_s15 = sphi %s1103_s15, %s15_s15  }
   0x2   : > { %p165_p1 = scmp.lt.s32.totalorder %s1067_s15, 3 }
   0x4   : > { %p166_p2 = pnand %p979_p0, %p165_p1 }
   0x5   : > { %p1113_p3 = scmp.lt.s32.totalorder (!%p166_p2), %s975_s16, 1  ;;  %s1070_s26 = smov (!%p166_p2), 8  }
   0x6   : > { %169 = sbr.rel (%p166_p2) target bundleno = 503 (0x1f7), region = 32  ;;  %s1071_s27 = smov (!%p166_p2), 16  }
   0x7   : > { %s1072_s28 = smov (!%p166_p2), 24   ;;  %s1073_s29 = smov (!%p166_p2), 32  }
   0x8   : > { %s1074_s30 = smov (!%p166_p2), 40   ;;  %s1075_s5 = smov (!%p166_p2), 48  }
   0x9   : > { %s1076_s8 = smov (!%p166_p2), 56   ;;  %s1077_s13 = smov (!%p166_p2), 64  }
   0xb   : > { %vm252_vm0 = vcmask 64512   ;;  %vm254_vm1 = vcmask 58368   ;;  %vm259_vm2 = vcmask 57344   ;;  %v1069_v0 = vmov 0.0   ;;  %s1391_s16 = smov (!%p1113_p3, %s975_s16), 1  ;;  %v1057_v55 = vld [vmem:[%s1386_s2 + $0x18] sm:$0xff]  }
   0xc   : > { %253 = vst.msk [vmem:[#allocation2] sm:$0xff] %vm252_vm0, %v1069_v0  ;;  %257 = vst.msk [vmem:[#allocation2 + $0x90] sm:$0xff] %vm252_vm0, %v1069_v0  ;;  %v985_v1 = vld [vmem:[%s1385_s1] ss:$0 sm:$0xff]  ;;  %s998_s20 = sshll.u32 %s1391_s16, 6  ;;  %vm759_vm3 = vcmask 1043456  }
   0xd   : > { %255 = vst.msk [vmem:[#allocation2 + $0x8] sm:$0x3] %vm254_vm1, %v1069_v0  ;;  %258 = vst.msk [vmem:[#allocation2 + $0x98] sm:$0x3] %vm254_vm1, %v1069_v0  ;;  %s199_s23 = scalar_lea.vmem %s1384_s0, %s998_s20  ;;  %v986_v2 = vld [vmem:[%s1385_s1 + $0x1] ss:$0 sm:$0xff] }
   0xe   : > { %261 = vst.msk [vmem:[#allocation2 + $0x10] sm:$0x1] %vm259_vm2, %v1069_v0  ;;  %262 = vst.msk [vmem:[#allocation2 + $0x20] sm:$0x1] %vm259_vm2, %v1069_v0  ;;  %v211_v3 = vld [vmem:[%s199_s23 + $0x8] sm:$0xff]  ;;  %v212_v4 = vld [vmem:[%s199_s23 + $0x10] sm:$0xff] }
   0xf   : > { %263 = vst.msk [vmem:[#allocation2 + $0x30] sm:$0x1] %vm259_vm2, %v1069_v0  ;;  %264 = vst.msk [vmem:[#allocation2 + $0x40] sm:$0x1] %vm259_vm2, %v1069_v0  ;;  %v210_v5 = vld [vmem:[%s199_s23] sm:$0xff]  ;;  %v224_v6 = vmul.f32 %v985_v1, %v211_v3  ;;  %v225_v7 = vmul.f32 %v985_v1, %v212_v4  ;;  %v213_v9 = vld [vmem:[%s199_s23 + $0x18] sm:$0xff] }
  0x10   : > { %265 = vst.msk [vmem:[#allocation2 + $0x50] sm:$0x1] %vm259_vm2, %v1069_v0  ;;  %266 = vst.msk [vmem:[#allocation2 + $0x60] sm:$0x1] %vm259_vm2, %v1069_v0  ;;  %v223_v8 = vmul.f32 %v985_v1, %v210_v5  ;;  %v214_v10 = vld [vmem:[%s199_s23 + $0x20] sm:$0xff]  ;;  %v216_v11 = vld [vmem:[%s199_s23 + $0x30] sm:$0xff]  ;;  %v226_v13 = vmul.f32 %v985_v1, %v213_v9 }
  0x11   : > { %267 = vst.msk [vmem:[#allocation2 + $0x70] sm:$0x1] %vm259_vm2, %v1069_v0  ;;  %268 = vst.msk [vmem:[#allocation2 + $0x80] sm:$0x1] %vm259_vm2, %v1069_v0  ;;  %v227_v14 = vmul.f32 %v985_v1, %v214_v10  ;;  %v229_v15 = vmul.f32 %v985_v1, %v216_v11  ;;  %v215_v16 = vld [vmem:[%s199_s23 + $0x28] sm:$0xff]  ;;  %v217_v17 = vld [vmem:[%s199_s23 + $0x38] sm:$0xff]  ;;  %v237_v18 = vadd.f32 %v986_v2, %v224_v6  ;;  %s1342_s23 = scalar_lea.vmem %s1387_s3, %s998_s20 }
  0x12   : > { %271 = vst.msk [vmem:[#allocation2 + $0x19] sm:$0x1] %vm259_vm2, %v1069_v0  ;;  %272 = vst.msk [vmem:[#allocation2 + $0x29] sm:$0x1] %vm259_vm2, %v1069_v0  ;;  %v238_v19 = vadd.f32 %v986_v2, %v225_v7  ;;  %v236_v20 = vadd.f32 %v986_v2, %v223_v8  ;;  %v228_v21 = vmul.f32 %v985_v1, %v215_v16  ;;  %v1056_v53 = vld [vmem:[%s1386_s2 + $0x20] ss:$0 sps:$4 sm:$0xff]  }
  0x13   : > { %273 = vst.msk [vmem:[#allocation2 + $0x39] sm:$0x1] %vm259_vm2, %v1069_v0  ;;  %274 = vst.msk [vmem:[#allocation2 + $0x49] sm:$0x1] %vm259_vm2, %v1069_v0  ;;  %v239_v24 = vadd.f32 %v986_v2, %v226_v13  ;;  %v240_v25 = vadd.f32 %v986_v2, %v227_v14  ;;  %v242_v26 = vadd.f32 %v986_v2, %v229_v15  ;;  %v245_v28 = vmax.f32 %v237_v18, 0.0  ;;  %v1058_v56 = vld [vmem:[%s1386_s2 + $0x10] sm:$0xff]  }
  0x14   : > { %275 = vst.msk [vmem:[#allocation2 + $0x59] sm:$0x1] %vm259_vm2, %v1069_v0  ;;  %276 = vst.msk [vmem:[#allocation2 + $0x69] sm:$0x1] %vm259_vm2, %v1069_v0  ;;  %v305_v12 = vld [vmem:[#allocation2 + $0x1] sm:$0xff]  ;;  %v230_v27 = vmul.f32 %v985_v1, %v217_v17  ;;  %v246_v29 = vmax.f32 %v238_v19, 0.0  ;;  %v241_v31 = vadd.f32 %v986_v2, %v228_v21  ;;  %1037 = vmatprep.subr.msk.bf16.mxu0 %vm759_vm3, %v1056_v53  ;;  %1038 = vmatprep.subr.msk.bf16.mxu1 %vm759_vm3, %v1056_v53 }
  0x15   : > { %277 = vst.msk [vmem:[#allocation2 + $0x79] sm:$0x1] %vm259_vm2, %v1069_v0  ;;  %278 = vst.msk [vmem:[#allocation2 + $0x89] sm:$0x1] %vm259_vm2, %v1069_v0  ;;  %321 = vrot.lane.b32.xlu0 %v305_v12, %s1070_s26  ;;  %v244_v30 = vmax.f32 %v236_v20, 0.0  ;;  %v247_v32 = vmax.f32 %v239_v24, 0.0 }
  0x16   : > { %260 = vst.msk [vmem:[#allocation2] sm:$0x1] %vm259_vm2, %v1069_v0  ;;  %270 = vst.msk [vmem:[#allocation2 + $0x9] sm:$0x1] %vm259_vm2, %v1069_v0  ;;  %v248_v33 = vmax.f32 %v240_v25, 0.0  ;;  %v250_v34 = vmax.f32 %v242_v26, 0.0  ;;  %v243_v35 = vadd.f32 %v986_v2, %v230_v27 }
  0x17   : > { %269 = vst.msk [vmem:[#allocation2 + $0x90] sm:$0x1] %vm259_vm2, %v1069_v0  ;;  %279 = vst.msk [vmem:[#allocation2 + $0x99] sm:$0x1] %vm259_vm2, %v1069_v0  ;;  %v249_v36 = vmax.f32 %v241_v31, 0.0  ;;  %v761_v54 = vsel %vm759_vm3, %v1056_v53, 0 }
  0x18   : > { %282 = vst.msk [vmem:[#allocation2 + $0x21] sm:$0xff] %vm252_vm0, %v245_v28  ;;  %283 = vst.msk [vmem:[#allocation2 + $0x31] sm:$0xff] %vm252_vm0, %v246_v29  ;;  %v251_v37 = vmax.f32 %v243_v35, 0.0  ;;  %1010 = vmatpush3.bf16.msra.mxu0 %v761_v54  ;;  %1032 = vmatpush3.bf16.msra.mxu1 %v761_v54  ;;  %v1059_v58 = vld [vmem:[%s1386_s2 + $0x8] sm:$0xff]   ;;  %v1060_v59 = vld [vmem:[%s1386_s2] sm:$0xff]   ;;  %vm345_vm4 = vcmask 130112  }
  0x19   : > { %281 = vst.msk [vmem:[#allocation2 + $0x11] sm:$0xff] %vm252_vm0, %v244_v30  ;;  %284 = vst.msk [vmem:[#allocation2 + $0x41] sm:$0xff] %vm252_vm0, %v247_v32  ;;  %1011 = vmatprep.subr.bf16.mxu0 %v1057_v55  ;;  %1028 = vmatprep.subr.bf16.mxu1 %v1057_v55  ;;  %vm394_vm5 = vcmask 195712   ;;  %v607_v7 = vld [vmem:[#allocation2 + $0x91] sm:$0xff]  ;;  %vm443_vm6 = vcmask 261312   ;;  %vm492_vm7 = vcmask 326912  }
  0x1a   : > { %285 = vst.msk [vmem:[#allocation2 + $0x51] sm:$0xff] %vm252_vm0, %v248_v33  ;;  %287 = vst.msk [vmem:[#allocation2 + $0x71] sm:$0xff] %vm252_vm0, %v250_v34  ;;  %vm541_vm8 = vcmask 392512   ;;  %vm591_vm9 = vcmask 458112   ;;  %vm640_vm10 = vcmask 523712   ;;  %vm689_vm11 = vcmask 589312  }
  0x1b   : > { %286 = vst.msk [vmem:[#allocation2 + $0x61] sm:$0xff] %vm252_vm0, %v249_v36  ;;  %288 = vst.msk [vmem:[#allocation2 + $0x81] sm:$0xff] %vm252_vm0, %v251_v37  ;;  %vm746_vm12 = vcmask 588800   ;;  %s984_s20 = sshll.u32 %s1391_s16, 1  ;;  %vm878_vm13 = vcmask 1040384  }
  0x1c   : > { %1012 = vmatpush3.bf16.msra.mxu0 %v1057_v55  ;;  %1033 = vmatpush3.bf16.msra.mxu1 %v1057_v55 }
  0x1d   : > { %v289_v22 = vld [vmem:[#allocation2] sm:$0xff]  ;;  %1013 = vmatprep.subr.bf16.mxu0 %v1058_v56  ;;  %1029 = vmatprep.subr.bf16.mxu1 %v1058_v56 }
  0x1e   : > { %v354_v23 = vld [vmem:[#allocation2 + $0x2] sm:$0xff]  ;;  %297 = vst.msk [vmem:[#allocation3] sm:$0xff] %vm252_vm0, %v289_v22  ;;  %v558_v5 = vld [vmem:[#allocation2 + $0x90] sm:$0xff] }
  0x1f   : > { %370 = vrot.lane.b32.xlu0 %v354_v23, %s1071_s27  ;;  %v307_v38 = vld [vmem:[#allocation2 + $0x21] sm:$0xff]  ;;  %v308_v40 = vld [vmem:[#allocation2 + $0x31] sm:$0xff] }
  0x20   : > { %v306_v39 = vld [vmem:[#allocation2 + $0x11] sm:$0xff]  ;;  %325 = vrot.lane.b32.xlu1 %v307_v38, %s1070_s26  ;;  %v356_v41 = vld [vmem:[#allocation2 + $0x22] sm:$0xff]  ;;  %1014 = vmatpush3.bf16.msra.mxu0 %v1058_v56 }
  0x21   : > { %v404_v42 = vld [vmem:[#allocation2 + $0x20] sm:$0xff]  ;;  %v403_v43 = vld [vmem:[#allocation2 + $0x10] sm:$0xff]  ;;  %1034 = vmatpush3.bf16.msra.mxu1 %v1058_v56  ;;  %1015 = vmatprep.subr.bf16.mxu0 %v1059_v58 }
  0x22   : > { %v406_v44 = vld [vmem:[#allocation2 + $0x40] sm:$0xff]  ;;  %v405_v45 = vld [vmem:[#allocation2 + $0x30] sm:$0xff]  ;;  %299 = vst.msk [vmem:[#allocation3 + $0x10] sm:$0xff] %vm252_vm0, %v404_v42  ;;  %298 = vst.msk [vmem:[#allocation3 + $0x8] sm:$0xff] %vm252_vm0, %v403_v43  ;;  %1030 = vmatprep.subr.bf16.mxu1 %v1059_v58 }
  0x23   : > { %323 = vrot.lane.b32.xlu0 %v306_v39, %s1070_s26  ;;  %301 = vst.msk [vmem:[#allocation3 + $0x20] sm:$0xff] %vm252_vm0, %v406_v44  ;;  %v1175_v46 = vld [vmem:[#allocation2 + $0x50] sm:$0xff]  ;;  %300 = vst.msk [vmem:[#allocation3 + $0x18] sm:$0xff] %vm252_vm0, %v405_v45  ;;  %v1182_v48 = vld [vmem:[#allocation2 + $0x60] sm:$0xff] }
  0x24   : > { %327 = vrot.lane.b32.xlu1 %v308_v40, %s1070_s26  ;;  %302 = vst.msk [vmem:[#allocation3 + $0x28] sm:$0xff] %vm252_vm0, %v1175_v46  ;;  %v355_v47 = vld [vmem:[#allocation2 + $0x12] sm:$0xff]  ;;  %303 = vst.msk [vmem:[#allocation3 + $0x30] sm:$0xff] %vm252_vm0, %v1182_v48  ;;  %v455_v51 = vld [vmem:[#allocation2 + $0x41] sm:$0xff]  ;;  %1016 = vmatpush3.bf16.msra.mxu0 %v1059_v58 }
  0x25   : > { %v1184_v49 = vld [vmem:[#allocation2 + $0x70] sm:$0xff]  ;;  %v504_v52 = vld [vmem:[#allocation2 + $0x42] sm:$0xff]  ;;  %1035 = vmatpush3.bf16.msra.mxu1 %v1059_v58  ;;  %1017 = vmatprep.subr.bf16.mxu0 %v1060_v59 }
  0x26   : > { %304 = vst.msk [vmem:[#allocation3 + $0x38] sm:$0xff] %vm252_vm0, %v1184_v49  ;;  %v357_v50 = vld [vmem:[#allocation2 + $0x32] sm:$0xff]  ;;  %v311_v60 = vld [vmem:[#allocation2 + $0x61] sm:$0xff]  ;;  %1031 = vmatprep.subr.bf16.mxu1 %v1060_v59 }
  0x27   : > { %374 = vrot.lane.b32.xlu0 %v356_v41, %s1071_s27  ;;  %v603_v57 = vld [vmem:[#allocation2 + $0x51] sm:$0xff]  ;;  %v360_v63 = vld [vmem:[#allocation2 + $0x62] sm:$0xff] }
  0x28   : > { %372 = vrot.lane.b32.xlu1 %v355_v47, %s1071_s27  ;;  %1018 = vmatpush3.bf16.msra.mxu0 %v1060_v59  ;;  %v652_v61 = vld [vmem:[#allocation2 + $0x52] sm:$0xff]  ;;  %v410_v1 = vld [vmem:[#allocation2 + $0x80] sm:$0xff] }
  0x29   : > { %1036 = vmatpush3.bf16.msra.mxu1 %v1060_v59  ;;  %v312_v62 = vld [vmem:[#allocation2 + $0x71] sm:$0xff]  ;;  %v459_v2 = vld [vmem:[#allocation2 + $0x81] sm:$0xff] }
  0x2a   : > { %v361_v0 = vld [vmem:[#allocation2 + $0x72] sm:$0xff]  ;;  %v508_v3 = vld [vmem:[#allocation2 + $0x82] sm:$0xff] }
  0x2b   : > { %419 = vrot.lane.b32.xlu0 %v403_v43, %s1072_s28  ;;  %v656_v12 = vld [vmem:[#allocation2 + $0x92] sm:$0xff] }
  0x2c   : > { %376 = vrot.lane.b32.xlu1 %v357_v50, %s1071_s27 }
  0x2f   : > { %423 = vrot.lane.b32.xlu0 %v405_v45, %s1072_s28 }
  0x30   : > { %421 = vrot.lane.b32.xlu1 %v404_v42, %s1072_s28 }
  0x33   : > { %468 = vrot.lane.b32.xlu0 %v306_v39, %s1073_s29 }
  0x34   : > { %425 = vrot.lane.b32.xlu1 %v406_v44, %s1072_s28 }
  0x37   : > { %472 = vrot.lane.b32.xlu0 %v308_v40, %s1073_s29 }
  0x38   : > { %470 = vrot.lane.b32.xlu1 %v307_v38, %s1073_s29 }
  0x3b   : > { %517 = vrot.lane.b32.xlu0 %v355_v47, %s1074_s30 }
  0x3c   : > { %474 = vrot.lane.b32.xlu1 %v455_v51, %s1073_s29 }
  0x3f   : > { %521 = vrot.lane.b32.xlu0 %v357_v50, %s1074_s30 }
  0x40   : > { %519 = vrot.lane.b32.xlu1 %v356_v41, %s1074_s30 }
  0x43   : > { %567 = vrot.lane.b32.xlu0 %v404_v42, %s1075_s5 }
  0x44   : > { %523 = vrot.lane.b32.xlu1 %v504_v52, %s1074_s30 }
  0x47   : > { %571 = vrot.lane.b32.xlu0 %v406_v44, %s1075_s5 }
  0x48   : > { %569 = vrot.lane.b32.xlu1 %v405_v45, %s1075_s5 }
  0x4b   : > { %616 = vrot.lane.b32.xlu0 %v307_v38, %s1076_s8 }
  0x4c   : > { %573 = vrot.lane.b32.xlu1 %v1175_v46, %s1075_s5 }
  0x4f   : > { %620 = vrot.lane.b32.xlu0 %v455_v51, %s1076_s8 }
  0x50   : > { %618 = vrot.lane.b32.xlu1 %v308_v40, %s1076_s8 }
  0x53   : > { %665 = vrot.lane.b32.xlu0 %v356_v41, %s1077_s13 }
  0x54   : > { %622 = vrot.lane.b32.xlu1 %v603_v57, %s1076_s8 }
  0x57   : > { %329 = vrot.lane.b32.xlu0 %v455_v51, %s1070_s26 }
  0x58   : > { %667 = vrot.lane.b32.xlu1 %v357_v50, %s1077_s13 }
  0x5b   : > { %669 = vrot.lane.b32.xlu0 %v504_v52, %s1077_s13 }
  0x5c   : > { %331 = vrot.lane.b32.xlu1 %v603_v57, %s1070_s26 }
  0x5f   : > { %333 = vrot.lane.b32.xlu0 %v311_v60, %s1070_s26 }
  0x60   : > { %671 = vrot.lane.b32.xlu1 %v652_v61, %s1077_s13 }
  0x63   : > { %378 = vrot.lane.b32.xlu0 %v504_v52, %s1071_s27 }
  0x64   : > { %335 = vrot.lane.b32.xlu1 %v312_v62, %s1070_s26  ;;  %s208_s26 = scalar_lea.vmem %s1388_s4, %s984_s20 }
  0x67   : > { %382 = vrot.lane.b32.xlu0 %v360_v63, %s1071_s27 }
  0x68   : > { %380 = vrot.lane.b32.xlu1 %v652_v61, %s1071_s27 }
  0x6b   : > { %427 = vrot.lane.b32.xlu0 %v1175_v46, %s1072_s28 }
  0x6c   : > { %384 = vrot.lane.b32.xlu1 %v361_v0, %s1071_s27 }
  0x6f   : > { %431 = vrot.lane.b32.xlu0 %v1184_v49, %s1072_s28 }
  0x70   : > { %429 = vrot.lane.b32.xlu1 %v1182_v48, %s1072_s28 }
  0x73   : > { %476 = vrot.lane.b32.xlu0 %v603_v57, %s1073_s29 }
  0x74   : > { %433 = vrot.lane.b32.xlu1 %v410_v1, %s1072_s28 }
  0x77   : > { %480 = vrot.lane.b32.xlu0 %v312_v62, %s1073_s29 }
  0x78   : > { %478 = vrot.lane.b32.xlu1 %v311_v60, %s1073_s29 }
  0x7b   : > { %525 = vrot.lane.b32.xlu0 %v652_v61, %s1074_s30 }
  0x7c   : > { %482 = vrot.lane.b32.xlu1 %v459_v2, %s1073_s29 }
  0x7f   : > { %529 = vrot.lane.b32.xlu0 %v361_v0, %s1074_s30 }
  0x80   : > { %527 = vrot.lane.b32.xlu1 %v360_v63, %s1074_s30 }
  0x83   : > { %575 = vrot.lane.b32.xlu0 %v1182_v48, %s1075_s5 }
  0x84   : > { %531 = vrot.lane.b32.xlu1 %v508_v3, %s1074_s30 }
  0x87   : > { %579 = vrot.lane.b32.xlu0 %v410_v1, %s1075_s5  ;;  %v322_v4 = vpop.permute.xlu0 %321 }
  0x88   : > { %346 = vst.msk [vmem:[#allocation3] sm:$0xff] %vm345_vm4, %v322_v4  ;;  %577 = vrot.lane.b32.xlu1 %v1184_v49, %s1075_s5 }
  0x8b   : > { %624 = vrot.lane.b32.xlu0 %v311_v60, %s1076_s8 }
  0x8c   : > { %581 = vrot.lane.b32.xlu1 %v558_v5, %s1075_s5 }
  0x8f   : > { %628 = vrot.lane.b32.xlu0 %v459_v2, %s1076_s8 }
  0x90   : > { %626 = vrot.lane.b32.xlu1 %v312_v62, %s1076_s8 }
  0x91   : > { %v371_v6 = vpop.permute.xlu0 %370 }
  0x92   : > { %395 = vst.msk [vmem:[#allocation3] sm:$0xff] %vm394_vm5, %v371_v6  ;;  %v326_v8 = vpop.permute.xlu1 %325 }
  0x93   : > { %673 = vrot.lane.b32.xlu0 %v360_v63, %s1077_s13  ;;  %348 = vst.msk [vmem:[#allocation3 + $0x10] sm:$0xff] %vm345_vm4, %v326_v8 }
  0x94   : > { %630 = vrot.lane.b32.xlu1 %v607_v7, %s1076_s8 }
  0x95   : > { %v324_v9 = vpop.permute.xlu0 %323 }
  0x96   : > { %347 = vst.msk [vmem:[#allocation3 + $0x8] sm:$0xff] %vm345_vm4, %v324_v9  ;;  %v328_v10 = vpop.permute.xlu1 %327 }
  0x97   : > { %677 = vrot.lane.b32.xlu0 %v508_v3, %s1077_s13  ;;  %349 = vst.msk [vmem:[#allocation3 + $0x18] sm:$0xff] %vm345_vm4, %v328_v10 }
  0x98   : > { %675 = vrot.lane.b32.xlu1 %v361_v0, %s1077_s13 }
  0x99   : > { %v375_v11 = vpop.permute.xlu0 %374 }
  0x9a   : > { %397 = vst.msk [vmem:[#allocation3 + $0x10] sm:$0xff] %vm394_vm5, %v375_v11  ;;  %v373_v13 = vpop.permute.xlu1 %372 }
  0x9b   : > { %396 = vst.msk [vmem:[#allocation3 + $0x8] sm:$0xff] %vm394_vm5, %v373_v13 }
  0x9c   : > { %679 = vrot.lane.b32.xlu1 %v656_v12, %s1077_s13 }
  0x9d   : > { %v420_v14 = vpop.permute.xlu0 %419 }
  0x9e   : > { %444 = vst.msk [vmem:[#allocation3] sm:$0xff] %vm443_vm6, %v420_v14  ;;  %v377_v15 = vpop.permute.xlu1 %376 }
  0x9f   : > { %398 = vst.msk [vmem:[#allocation3 + $0x18] sm:$0xff] %vm394_vm5, %v377_v15 }
  0xa1   : > { %v424_v16 = vpop.permute.xlu0 %423 }
  0xa2   : > { %446 = vst.msk [vmem:[#allocation3 + $0x10] sm:$0xff] %vm443_vm6, %v424_v16  ;;  %v422_v17 = vpop.permute.xlu1 %421 }
  0xa3   : > { %445 = vst.msk [vmem:[#allocation3 + $0x8] sm:$0xff] %vm443_vm6, %v422_v17 }
  0xa5   : > { %v469_v18 = vpop.permute.xlu0 %468 }
  0xa6   : > { %493 = vst.msk [vmem:[#allocation3] sm:$0xff] %vm492_vm7, %v469_v18  ;;  %v426_v19 = vpop.permute.xlu1 %425 }
  0xa7   : > { %447 = vst.msk [vmem:[#allocation3 + $0x18] sm:$0xff] %vm443_vm6, %v426_v19 }
  0xa9   : > { %v473_v20 = vpop.permute.xlu0 %472 }
  0xaa   : > { %495 = vst.msk [vmem:[#allocation3 + $0x10] sm:$0xff] %vm492_vm7, %v473_v20  ;;  %v471_v21 = vpop.permute.xlu1 %470 }
  0xab   : > { %494 = vst.msk [vmem:[#allocation3 + $0x8] sm:$0xff] %vm492_vm7, %v471_v21 }
  0xad   : > { %v518_v22 = vpop.permute.xlu0 %517 }
  0xae   : > { %542 = vst.msk [vmem:[#allocation3] sm:$0xff] %vm541_vm8, %v518_v22  ;;  %v475_v23 = vpop.permute.xlu1 %474 }
  0xaf   : > { %496 = vst.msk [vmem:[#allocation3 + $0x18] sm:$0xff] %vm492_vm7, %v475_v23 }
  0xb1   : > { %v522_v24 = vpop.permute.xlu0 %521 }
  0xb2   : > { %544 = vst.msk [vmem:[#allocation3 + $0x10] sm:$0xff] %vm541_vm8, %v522_v24  ;;  %v520_v25 = vpop.permute.xlu1 %519 }
  0xb3   : > { %543 = vst.msk [vmem:[#allocation3 + $0x8] sm:$0xff] %vm541_vm8, %v520_v25 }
  0xb5   : > { %v568_v26 = vpop.permute.xlu0 %567 }
  0xb6   : > { %592 = vst.msk [vmem:[#allocation3] sm:$0xff] %vm591_vm9, %v568_v26  ;;  %v524_v27 = vpop.permute.xlu1 %523 }
  0xb7   : > { %545 = vst.msk [vmem:[#allocation3 + $0x18] sm:$0xff] %vm541_vm8, %v524_v27 }
  0xb9   : > { %v572_v28 = vpop.permute.xlu0 %571 }
  0xba   : > { %594 = vst.msk [vmem:[#allocation3 + $0x10] sm:$0xff] %vm591_vm9, %v572_v28  ;;  %v570_v29 = vpop.permute.xlu1 %569 }
  0xbb   : > { %593 = vst.msk [vmem:[#allocation3 + $0x8] sm:$0xff] %vm591_vm9, %v570_v29 }
  0xbd   : > { %v617_v30 = vpop.permute.xlu0 %616 }
  0xbe   : > { %641 = vst.msk [vmem:[#allocation3] sm:$0xff] %vm640_vm10, %v617_v30  ;;  %v574_v31 = vpop.permute.xlu1 %573 }
  0xbf   : > { %595 = vst.msk [vmem:[#allocation3 + $0x18] sm:$0xff] %vm591_vm9, %v574_v31 }
  0xc1   : > { %v621_v32 = vpop.permute.xlu0 %620 }
  0xc2   : > { %643 = vst.msk [vmem:[#allocation3 + $0x10] sm:$0xff] %vm640_vm10, %v621_v32  ;;  %v619_v33 = vpop.permute.xlu1 %618 }
  0xc3   : > { %642 = vst.msk [vmem:[#allocation3 + $0x8] sm:$0xff] %vm640_vm10, %v619_v33 }
  0xc5   : > { %v666_v34 = vpop.permute.xlu0 %665 }
  0xc6   : > { %690 = vst.msk [vmem:[#allocation3] sm:$0xff] %vm689_vm11, %v666_v34  ;;  %v623_v35 = vpop.permute.xlu1 %622 }
  0xc7   : > { %644 = vst.msk [vmem:[#allocation3 + $0x18] sm:$0xff] %vm640_vm10, %v623_v35 }
  0xc9   : > { %v330_v36 = vpop.permute.xlu0 %329 }
  0xca   : > { %350 = vst.msk [vmem:[#allocation3 + $0x20] sm:$0xff] %vm345_vm4, %v330_v36  ;;  %v668_v37 = vpop.permute.xlu1 %667 }
  0xcb   : > { %691 = vst.msk [vmem:[#allocation3 + $0x8] sm:$0xff] %vm689_vm11, %v668_v37 }
  0xcd   : > { %v670_v38 = vpop.permute.xlu0 %669  ;;  %v698_v41 = vld [vmem:[#allocation3] sm:$0xff] }
  0xce   : > { %692 = vst.msk [vmem:[#allocation3 + $0x10] sm:$0xff] %vm689_vm11, %v670_v38  ;;  %v332_v39 = vpop.permute.xlu1 %331 }
  0xcf   : > { %351 = vst.msk [vmem:[#allocation3 + $0x28] sm:$0xff] %vm345_vm4, %v332_v39 }
  0xd1   : > { %v334_v40 = vpop.permute.xlu0 %333 }
  0xd2   : > { %352 = vst.msk [vmem:[#allocation3 + $0x30] sm:$0xff] %vm345_vm4, %v334_v40  ;;  %v672_v42 = vpop.permute.xlu1 %671  ;;  %v699_v43 = vld [vmem:[#allocation3 + $0x8] sm:$0xff] }
  0xd3   : > { %693 = vst.msk [vmem:[#allocation3 + $0x18] sm:$0xff] %vm689_vm11, %v672_v42  ;;  %v706_v45 = vpack.c.bf16 %v699_v43, %v698_v41 }
  0xd5   : > { %v379_v44 = vpop.permute.xlu0 %378  ;;  %1019 = vmatprep.mubr.msk.bf16.mxu0 %vm746_vm12, %v706_v45  ;;  %v700_v48 = vld [vmem:[#allocation3 + $0x10] sm:$0xff] }
  0xd6   : > { %399 = vst.msk [vmem:[#allocation3 + $0x20] sm:$0xff] %vm394_vm5, %v379_v44  ;;  %v336_v46 = vpop.permute.xlu1 %335 }
  0xd7   : > { %353 = vst.msk [vmem:[#allocation3 + $0x38] sm:$0xff] %vm345_vm4, %v336_v46 }
  0xd9   : > { %v383_v47 = vpop.permute.xlu0 %382 }
  0xda   : > { %401 = vst.msk [vmem:[#allocation3 + $0x30] sm:$0xff] %vm394_vm5, %v383_v47  ;;  %v381_v49 = vpop.permute.xlu1 %380  ;;  %v701_v50 = vld [vmem:[#allocation3 + $0x18] sm:$0xff] }
  0xdb   : > { %400 = vst.msk [vmem:[#allocation3 + $0x28] sm:$0xff] %vm394_vm5, %v381_v49  ;;  %v707_v52 = vpack.c.bf16 %v701_v50, %v700_v48 }
  0xdd   : > { %v428_v51 = vpop.permute.xlu0 %427  ;;  %1020 = vmatmul.mubr.msk.bf16.vlgmr.msra.gmra.mxu0 %vm746_vm12, %v707_v52 }
  0xde   : > { %448 = vst.msk [vmem:[#allocation3 + $0x20] sm:$0xff] %vm443_vm6, %v428_v51  ;;  %v385_v53 = vpop.permute.xlu1 %384 }
  0xdf   : > { %402 = vst.msk [vmem:[#allocation3 + $0x38] sm:$0xff] %vm394_vm5, %v385_v53 }
  0xe1   : > { %v432_v54 = vpop.permute.xlu0 %431 }
  0xe2   : > { %450 = vst.msk [vmem:[#allocation3 + $0x30] sm:$0xff] %vm443_vm6, %v432_v54  ;;  %v430_v55 = vpop.permute.xlu1 %429 }
  0xe3   : > { %449 = vst.msk [vmem:[#allocation3 + $0x28] sm:$0xff] %vm443_vm6, %v430_v55 }
  0xe5   : > { %v477_v56 = vpop.permute.xlu0 %476 }
  0xe6   : > { %497 = vst.msk [vmem:[#allocation3 + $0x20] sm:$0xff] %vm492_vm7, %v477_v56  ;;  %v434_v57 = vpop.permute.xlu1 %433 }
  0xe7   : > { %451 = vst.msk [vmem:[#allocation3 + $0x38] sm:$0xff] %vm443_vm6, %v434_v57 }
  0xe9   : > { %v481_v58 = vpop.permute.xlu0 %480 }
  0xea   : > { %499 = vst.msk [vmem:[#allocation3 + $0x30] sm:$0xff] %vm492_vm7, %v481_v58  ;;  %v479_v59 = vpop.permute.xlu1 %478 }
  0xeb   : > { %498 = vst.msk [vmem:[#allocation3 + $0x28] sm:$0xff] %vm492_vm7, %v479_v59 }
  0xed   : > { %v526_v60 = vpop.permute.xlu0 %525 }
  0xee   : > { %546 = vst.msk [vmem:[#allocation3 + $0x20] sm:$0xff] %vm541_vm8, %v526_v60  ;;  %v483_v61 = vpop.permute.xlu1 %482 }
  0xef   : > { %500 = vst.msk [vmem:[#allocation3 + $0x38] sm:$0xff] %vm492_vm7, %v483_v61 }
  0xf1   : > { %v530_v62 = vpop.permute.xlu0 %529 }
  0xf2   : > { %548 = vst.msk [vmem:[#allocation3 + $0x30] sm:$0xff] %vm541_vm8, %v530_v62  ;;  %v528_v63 = vpop.permute.xlu1 %527 }
  0xf3   : > { %547 = vst.msk [vmem:[#allocation3 + $0x28] sm:$0xff] %vm541_vm8, %v528_v63 }
  0xf5   : > { %v576_v0 = vpop.permute.xlu0 %575 }
  0xf6   : > { %596 = vst.msk [vmem:[#allocation3 + $0x20] sm:$0xff] %vm591_vm9, %v576_v0  ;;  %v532_v1 = vpop.permute.xlu1 %531 }
  0xf7   : > { %549 = vst.msk [vmem:[#allocation3 + $0x38] sm:$0xff] %vm541_vm8, %v532_v1 }
  0xf9   : > { %v580_v2 = vpop.permute.xlu0 %579 }
  0xfa   : > { %598 = vst.msk [vmem:[#allocation3 + $0x30] sm:$0xff] %vm591_vm9, %v580_v2  ;;  %v578_v3 = vpop.permute.xlu1 %577 }
  0xfb   : > { %597 = vst.msk [vmem:[#allocation3 + $0x28] sm:$0xff] %vm591_vm9, %v578_v3 }
  0xfd   : > { %v625_v4 = vpop.permute.xlu0 %624 }
  0xfe   : > { %645 = vst.msk [vmem:[#allocation3 + $0x20] sm:$0xff] %vm640_vm10, %v625_v4  ;;  %v582_v5 = vpop.permute.xlu1 %581 }
  0xff   : > { %599 = vst.msk [vmem:[#allocation3 + $0x38] sm:$0xff] %vm591_vm9, %v582_v5 }
 0x101   : > { %v629_v6 = vpop.permute.xlu0 %628 }
 0x102   : > { %647 = vst.msk [vmem:[#allocation3 + $0x30] sm:$0xff] %vm640_vm10, %v629_v6  ;;  %v627_v7 = vpop.permute.xlu1 %626 }
 0x103   : > { %646 = vst.msk [vmem:[#allocation3 + $0x28] sm:$0xff] %vm640_vm10, %v627_v7 }
 0x105   : > { %v674_v8 = vpop.permute.xlu0 %673 }
 0x106   : > { %694 = vst.msk [vmem:[#allocation3 + $0x20] sm:$0xff] %vm689_vm11, %v674_v8  ;;  %v631_v9 = vpop.permute.xlu1 %630 }
 0x107   : > { %648 = vst.msk [vmem:[#allocation3 + $0x38] sm:$0xff] %vm640_vm10, %v631_v9 }
 0x109   : > { %v678_v10 = vpop.permute.xlu0 %677 }
 0x10a   : > { %696 = vst.msk [vmem:[#allocation3 + $0x30] sm:$0xff] %vm689_vm11, %v678_v10  ;;  %v676_v11 = vpop.permute.xlu1 %675 }
 0x10b   : > { %695 = vst.msk [vmem:[#allocation3 + $0x28] sm:$0xff] %vm689_vm11, %v676_v11 }
 0x10d   : > { %v702_v13 = vld [vmem:[#allocation3 + $0x20] sm:$0xff] }
 0x10e   : > { %v680_v12 = vpop.permute.xlu1 %679 }
 0x10f   : > { %697 = vst.msk [vmem:[#allocation3 + $0x38] sm:$0xff] %vm689_vm11, %v680_v12 }
 0x111   : > { %v704_v16 = vld [vmem:[#allocation3 + $0x30] sm:$0xff] }
 0x112   : > { %v703_v14 = vld [vmem:[#allocation3 + $0x28] sm:$0xff] }
 0x113   : > { %v708_v15 = vpack.c.bf16 %v703_v14, %v702_v13 }
 0x115   : > { %1023 = vmatprep.mubr.msk.bf16.mxu1 %vm746_vm12, %v708_v15 }
 0x116   : > { %v705_v17 = vld [vmem:[#allocation3 + $0x38] sm:$0xff] }
 0x117   : > { %v709_v18 = vpack.c.bf16 %v705_v17, %v704_v16 }
 0x119   : > { %1024 = vmatmul.mubr.msk.bf16.vlgmr.msra.gmra.mxu1 %vm746_vm12, %v709_v18 }
 0x19d   : > { %v1021_v19 = vpop.f32.mrf.mxu0 }
 0x19e   : > { %883 = vst.msk [vmem:[%s1342_s23 + $0x10] sm:$0xff] %vm252_vm0, %v1021_v19  ;;  %v851_v29 = vmul.f32 %v1021_v19, %v1021_v19  ;;  %v831_v32 = vsel %vm252_vm0, %v1021_v19, 0.0 }
 0x19f   : > { %v797_v20 = vpop.f32.mrf.mxu0 }
 0x1a0   : > { %881 = vst.msk [vmem:[%s1342_s23] sm:$0xff] %vm252_vm0, %v797_v20  ;;  %v849_v24 = vmul.f32 %v797_v20, %v797_v20  ;;  %v828_v26 = vsel %vm252_vm0, %v797_v20, 0.0  ;;  %v860_v35 = vsel %vm252_vm0, %v851_v29, 0.0 }
 0x1a1   : > { %v1022_v21 = vpop.f32.mrf.mxu0 }
 0x1a2   : > { %884 = vst.msk [vmem:[%s1342_s23 + $0x18] sm:$0xff] %vm252_vm0, %v1022_v21  ;;  %v857_v30 = vsel %vm252_vm0, %v849_v24, 0.0  ;;  %v852_v36 = vmul.f32 %v1022_v21, %v1022_v21  ;;  %v833_v39 = vsel %vm252_vm0, %v1022_v21, 0.0 }
 0x1a3   : > { %v800_v22 = vpop.f32.mrf.mxu0 }
 0x1a4   : > { %882 = vst.msk [vmem:[%s1342_s23 + $0x8] sm:$0xff] %vm252_vm0, %v800_v22  ;;  %v850_v23 = vmul.f32 %v800_v22, %v800_v22  ;;  %v829_v25 = vsel %vm252_vm0, %v800_v22, 0.0  ;;  %v862_v44 = vsel %vm252_vm0, %v852_v36, 0.0 }
 0x1a5   : > { %v830_v28 = vadd.f32 %v829_v25, %v828_v26 }
 0x1a6   : > { %v858_v27 = vsel %vm252_vm0, %v850_v23, 0.0 }
 0x1a7   : > { %v859_v31 = vadd.f32 %v858_v27, %v857_v30  ;;  %v832_v33 = vadd.f32 %v831_v32, %v830_v28 }
 0x1a9   : > { %v861_v37 = vadd.f32 %v860_v35, %v859_v31  ;;  %v834_v42 = vadd.f32 %v833_v39, %v832_v33 }
 0x1ab   : > { %v863_v47 = vadd.f32 %v862_v44, %v861_v37 }
 0x1d9   : > { %v1025_v34 = vpop.f32.mrf.mxu1 }
 0x1da   : > { %887 = vst.msk [vmem:[%s1342_s23 + $0x30] sm:$0xff] %vm252_vm0, %v1025_v34  ;;  %v855_v49 = vmul.f32 %v1025_v34, %v1025_v34  ;;  %v839_v54 = vsel %vm252_vm0, %v1025_v34, 0.0 }
 0x1db   : > { %v813_v38 = vpop.f32.mrf.mxu1 }
 0x1dc   : > { %v835_v40 = vsel %vm252_vm0, %v813_v38, 0.0  ;;  %v853_v41 = vmul.f32 %v813_v38, %v813_v38  ;;  %885 = vst.msk [vmem:[%s1342_s23 + $0x20] sm:$0xff] %vm252_vm0, %v813_v38  ;;  %v868_v59 = vsel %vm252_vm0, %v855_v49, 0.0 }
 0x1dd   : > { %v1026_v43 = vpop.f32.mrf.mxu1  ;;  %v836_v46 = vadd.f32 %v835_v40, %v834_v42 }
 0x1de   : > { %v864_v45 = vsel %vm252_vm0, %v853_v41, 0.0  ;;  %888 = vst.msk [vmem:[%s1342_s23 + $0x38] sm:$0xff] %vm252_vm0, %v1026_v43  ;;  %v856_v55 = vmul.f32 %v1026_v43, %v1026_v43  ;;  %v841_v60 = vsel %vm252_vm0, %v1026_v43, 0.0 }
 0x1df   : > { %v816_v48 = vpop.f32.mrf.mxu1  ;;  %v865_v52 = vadd.f32 %v864_v45, %v863_v47 }
 0x1e0   : > { %v837_v50 = vsel %vm252_vm0, %v816_v48, 0.0  ;;  %v854_v51 = vmul.f32 %v816_v48, %v816_v48  ;;  %886 = vst.msk [vmem:[%s1342_s23 + $0x28] sm:$0xff] %vm252_vm0, %v816_v48  ;;  %v870_v63 = vsel %vm252_vm0, %v856_v55, 0.0 }
 0x1e1   : > { %v838_v53 = vadd.f32 %v837_v50, %v836_v46 }
 0x1e2   : > { %v866_v56 = vsel %vm252_vm0, %v854_v51, 0.0 }
 0x1e3   : > { %v840_v57 = vadd.f32 %v839_v54, %v838_v53  ;;  %v867_v58 = vadd.f32 %v866_v56, %v865_v52 }
 0x1e5   : > { %v842_v61 = vadd.f32 %v841_v60, %v840_v57  ;;  %v869_v62 = vadd.f32 %v868_v59, %v867_v58 }
 0x1e7   : > { %v843_v0 = vrot.slane %v842_v61, 4  ;;  %v871_v1 = vadd.f32 %v870_v63, %v869_v62 }
 0x1e9   : > { %v844_v2 = vadd.f32 %v843_v0, %v842_v61  ;;  %v872_v3 = vrot.slane %v871_v1, 4 }
 0x1eb   : > { %v845_v4 = vrot.slane %v844_v2, 2  ;;  %v873_v5 = vadd.f32 %v872_v3, %v871_v1 }
 0x1ed   : > { %v846_v6 = vadd.f32 %v845_v4, %v844_v2  ;;  %v874_v7 = vrot.slane %v873_v5, 2 }
 0x1ef   : > { %v847_v8 = vrot.slane %v846_v6, 1  ;;  %v875_v9 = vadd.f32 %v874_v7, %v873_v5 }
 0x1f1   : > { %v876_v10 = vrot.slane %v875_v9, 1  ;;  %v848_v11 = vadd.f32 %v847_v8, %v846_v6 }
 0x1f3   : > { %v877_v12 = vadd.f32 %v876_v10, %v875_v9 }
 0x1f5   : > { %v879_v13 = vsel %vm878_vm13, %v848_v11, %v877_v12 }
 0x1f6   : > { %880 = vst.msk [vmem:[%s208_s26] sm:$0x3] %vm254_vm1, %v879_v13 }
 0x1f7 PF: > { %s15_s15 = sadd.s32 1, %s1067_s15  }
 0x1f8   : > { %p12_p4 = scmp.ge.s32.totalorder %s15_s15, 4  }
 0x1fa   :  { %14 = sbr.rel (!%p12_p4) target bundleno = 1 (0x1), region = 77 }

</bundles_post_ra>
